<compile_context>
chip_gen: v5e
topology: v5e:2x2
jax: 0.10.0
libtpu: 0.0.40
codegen_flags: <defaults>
</compile_context>

<pallas_src>
import jax
import jax.numpy as jnp
from jax import lax
from jax.experimental import pallas as pl
from jax.experimental.pallas import tpu as pltpu


def _round_up(n: int, m: int) -> int:
    return ((n + m - 1) // m) * m


def _cdiv(a: int, b: int) -> int:
    return (a + b - 1) // b


def _make_readout_kernel(num_layers: int, num_nodes: int, tile_nodes: int,
                         num_graphs: int, inv_scale: float):
    """Kernel body: fused (dense|gate) GatedMLP + row-layout epilogue + graph partials."""

    def kernel(*refs):
        batch_ref, x_ref, elem_ref = refs[:3]                 # [1,tm] i32, [tm,F] f32, [1,tm] f32
        wb_refs = refs[3:3 + 2 * num_layers]                  # (w0, b0, w1, b1, ...)
        sa_ref, partial_ref = refs[3 + 2 * num_layers:]

        tm = tile_nodes
        pid = pl.program_id(0)

        # Fused GatedMLP: `state` carries [dense | gate] activations side by side.
        # bf16 only as MXU inputs; accumulation, bias and activation math stay f32.
        # TODO(synk): GatedMLP hidden activation assumed to be SiLU (swish), shared
        # by both branches, as in M3GNet (required for the dense|gate fusion).
        state = x_ref[...].astype(jnp.bfloat16)               # in-kernel cast, no wrapper pass
        z_final = None
        for l in range(num_layers):
            w = wb_refs[2 * l][...]                           # bf16 weights
            b = wb_refs[2 * l + 1][...]                       # f32 [1, width]
            z = jnp.dot(state, w, preferred_element_type=jnp.float32) + b
            if l < num_layers - 1:
                state = jax.nn.silu(z).astype(jnp.bfloat16)   # bf16 for next MXU op
            else:
                z_final = z                                   # f32 [tm, 2]

        # Epilogue in row layout: one cheap XLU relayout of the two narrow columns,
        # then every VPU op runs lane-dense on [1, tm] rows.
        dense_row = jnp.transpose(z_final[:, 0:1])            # [1, tm]
        gate_row = jnp.transpose(z_final[:, 1:2])             # [1, tm]
        # is_output=True: dense branch has no final activation, gate branch -> sigmoid.
        atomic_row = dense_row * jax.nn.sigmoid(gate_row)     # [1, tm]
        scaled_row = elem_ref[...] * inv_scale + atomic_row   # [1, tm] f32

        # Ragged-tail mask (no wrapper-side padding): lanes beyond num_nodes are zeroed
        # so garbage rows never reach the per-node output or the per-graph sums.
        col = lax.broadcasted_iota(jnp.int32, (1, tm), 1)
        valid = col < (num_nodes - pid * tm)
        scaled_valid = jnp.where(valid, scaled_row, 0.0)      # [1, tm]

        sa_ref[...] = scaled_valid                            # lane-dense per-node output

        # scatter_sum(scaled_atomic, index=batch, dim_size=num_graphs): [G, tm] mask
        # against the [1, tm] batch row, lane-axis reduce (XLU).  Per-tile partials so
        # each grid step writes its own block (node axis stays "parallel").
        # Note: if num_graphs ever grows beyond O(10), switch to an MXU one-hot reduce.
        gid = lax.broadcasted_iota(jnp.int32, (num_graphs, tm), 0)
        mask = gid == batch_ref[...]                          # [G, tm]
        contrib = jnp.where(mask, scaled_valid, 0.0)          # [G, tm]
        partial_ref[...] = jnp.sum(contrib, axis=1).reshape(1, 1, num_graphs)

    return kernel


def _pack_gated_mlp_params(params):
    """Fuse dense & gate branches into one weight stack.

    Layer 0 shares the input x, so its two [F, d] weights concatenate along the
    output axis.  Later layers act on the concatenated [h | g] state, so their
    weights become block-diagonal (the zero blocks add exact zeros -> bit-identical
    results).  Weights -> bf16 (MXU inputs), biases stay f32.  Fusion is valid only
    because both branches share the same hidden activation (SiLU in M3GNet).
    """
    packed = []
    for l, ((wd, bd), (wg, bg)) in enumerate(zip(params["dense"], params["gate"])):
        if l == 0:
            w = jnp.concatenate([wd, wg], axis=1)
        else:
            z_dg = jnp.zeros((wd.shape[0], wg.shape[1]), wd.dtype)
            z_gd = jnp.zeros((wg.shape[0], wd.shape[1]), wd.dtype)
            w = jnp.block([[wd, z_dg], [z_gd, wg]])
        b = jnp.concatenate([bd, bg]).reshape(1, -1)
        packed.append((w.astype(jnp.bfloat16), b.astype(jnp.float32)))
    return packed


def atom_wise_readout(x, elemental_energies, batch, num_graphs, params, scale,
                      *, tile_nodes=8192):
    """Returns (scaled_atomic_energies [N], scaled_total_energy [G], total_energy [G])."""
    num_nodes, in_features = x.shape
    num_layers = len(params["dense"])

    assert tile_nodes % 128 == 0, "tile_nodes must be a multiple of 128"
    if num_nodes > 128:
        # Keep >= 2 tiles when possible so v7x's two TensorCores both get work on the
        # "parallel" node axis (v5e/v6e are single-TC and unaffected).
        tile_nodes = min(tile_nodes, _round_up(_cdiv(num_nodes, 2), 128))
    else:
        tile_nodes = 128
    num_tiles = _cdiv(num_nodes, tile_nodes)

    # Lane-dense per-node scalars as [1, N] rows; no padding and no wrapper-side bf16
    # cast pass over x — the ragged final block is masked in-kernel.
    batch_row = batch.reshape(1, num_nodes).astype(jnp.int32)
    elem_row = elemental_energies.reshape(1, num_nodes).astype(jnp.float32)
    x_f32 = x.astype(jnp.float32)

    flat_params = []
    for w, b in _pack_gated_mlp_params(params):
        flat_params += [w, b]

    kernel = _make_readout_kernel(num_layers, num_nodes, tile_nodes, num_graphs,
                                  1.0 / float(scale))

    in_specs = [
        pl.BlockSpec((1, tile_nodes), lambda i: (0, i)),            # batch (graph ids) row
        pl.BlockSpec((tile_nodes, in_features), lambda i: (i, 0)),  # node features (f32)
        pl.BlockSpec((1, tile_nodes), lambda i: (0, i)),            # elemental energies row
    ] + [pl.BlockSpec(p.shape, lambda i: (0, 0)) for p in flat_params]

    out_specs = (
        pl.BlockSpec((1, tile_nodes), lambda i: (0, i)),            # lane-dense per-node row
        pl.BlockSpec((1, 1, num_graphs), lambda i: (i, 0, 0)),      # per-tile graph partials
    )
    out_shape = (
        jax.ShapeDtypeStruct((1, num_nodes), jnp.float32),
        jax.ShapeDtypeStruct((num_tiles, 1, num_graphs), jnp.float32),
    )

    sa_row, partials = pl.pallas_call(
        kernel,
        grid=(num_tiles,),
        in_specs=in_specs,
        out_specs=out_specs,
        out_shape=out_shape,
        compiler_params=pltpu.CompilerParams(dimension_semantics=("parallel",)),
    )(batch_row, x_f32, elem_row, *flat_params)

    scaled_atomic = sa_row[0]
    scaled_total = jnp.sum(partials, axis=(0, 1))    # tiny [G] reduction in plain JAX
    total = scale * scaled_total
    return scaled_atomic, scaled_total, total


def init_params(key, in_features, num_layers):
    """Deterministic synthetic weights matching GatedMLP([F]*(L-1) + [1])."""
    dimensions = [in_features] * (num_layers - 1) + [1]
    dims = [in_features] + dimensions
    keys = jax.random.split(key, 4 * num_layers)
    k = 0
    params = {"dense": [], "gate": []}
    for branch in ("dense", "gate"):
        for l in range(num_layers):
            fan_in, fan_out = dims[l], dims[l + 1]
            w = jax.random.normal(keys[k], (fan_in, fan_out), jnp.float32) / jnp.sqrt(fan_in)
            k += 1
            b = 0.01 * jax.random.normal(keys[k], (fan_out,), jnp.float32)
            k += 1
            params[branch].append((w, b))
    return params


def ref_forward(x, elem, batch, num_graphs, params, scale):
    """Pure-JAX reference of the PyTorch forward pass, using the same mixed precision
    as the kernel (bf16 matmul inputs, f32 accumulation and f32 activation math)."""
    num_layers = len(params["dense"])

    def branch(branch_params, is_gate):
        h = x
        for l, (w, b) in enumerate(branch_params):
            h = jnp.dot(h.astype(jnp.bfloat16), w.astype(jnp.bfloat16),
                        preferred_element_type=jnp.float32) + b
            if l < num_layers - 1:
                h = jax.nn.silu(h)
            elif is_gate:
                h = jax.nn.sigmoid(h)
        return h

    atomic = (branch(params["dense"], False) * branch(params["gate"], True))[:, 0]
    scaled_atomic = elem / scale + atomic
    scaled_total = jax.ops.segment_sum(scaled_atomic, batch, num_segments=num_graphs)
    total = scale * scaled_total
    return scaled_atomic, scaled_total, total


if __name__ == "__main__":
    in_features = 32
    num_layers = 3
    scale = 2.5
    num_nodes = 200        # deliberately not a tile multiple -> exercises ragged-tail masking
    num_graphs = 4         # LATTICE.size(0)

    key = jax.random.PRNGKey(0)
    k_x, k_e, k_b, k_p = jax.random.split(key, 4)
    x = jax.random.normal(k_x, (num_nodes, in_features), jnp.float32)
    elemental_energies = jax.random.normal(k_e, (num_nodes,), jnp.float32)
    batch = jnp.sort(jax.random.randint(k_b, (num_nodes,), 0, num_graphs)).astype(jnp.int32)
    params = init_params(k_p, in_features, num_layers)

    # Default tile (8192) is clamped to ceil(N/2) rounded to 128 -> 128 here, giving a
    # 2-step grid that exercises both the multi-tile path and the ragged final tile.
    scaled_atomic, scaled_total, total = atom_wise_readout(
        x, elemental_energies, batch, num_graphs, params, scale)
    jax.block_until_ready((scaled_atomic, scaled_total, total))

    ref_sa, ref_st, ref_t = ref_forward(
        x, elemental_energies, batch, num_graphs, params, scale)

    # Tolerances account for bf16 matmul inputs and minor transcendental-ulp
    # differences between the Mosaic and XLA lowerings of SiLU/sigmoid.
    assert jnp.allclose(scaled_atomic, ref_sa, rtol=1e-2, atol=1e-2)
    assert jnp.allclose(scaled_total, ref_st, rtol=1e-2, atol=1e-2)
    assert jnp.allclose(total, ref_t, rtol=1e-2, atol=1e-2)

    print("KERNEL_OK")
</pallas_src>

<mosaic_0001>
module attributes {stable_mosaic.version = 11 : i64} {
  func.func @kernel(%arg0: i32, %arg1: memref<1x128xi32, #tpu.memory_space<vmem>>, %arg2: memref<128x32xf32, #tpu.memory_space<vmem>>, %arg3: memref<1x128xf32, #tpu.memory_space<vmem>>, %arg4: memref<32x64xbf16, #tpu.memory_space<vmem>>, %arg5: memref<1x64xf32, #tpu.memory_space<vmem>>, %arg6: memref<64x64xbf16, #tpu.memory_space<vmem>>, %arg7: memref<1x64xf32, #tpu.memory_space<vmem>>, %arg8: memref<64x2xbf16, #tpu.memory_space<vmem>>, %arg9: memref<1x2xf32, #tpu.memory_space<vmem>>, %arg10: memref<1x128xf32, #tpu.memory_space<vmem>>, %arg11: memref<1x1x4xf32, #tpu.memory_space<vmem>>) attributes {dimension_semantics = [#tpu.dimension_semantics<parallel>], iteration_bounds = array<i64: 2>, scalar_prefetch = 0 : i64, scratch_operands = 0 : i64, tpu.core_type = #tpu.core_type<tc>, window_params = [{transform_indices = @transform_0, window_bounds = array<i64: 1, 128>}, {transform_indices = @transform_1, window_bounds = array<i64: 128, 32>}, {transform_indices = @transform_2, window_bounds = array<i64: 1, 128>}, {pipeline_mode = #tpu.pipeline_mode<synchronous>, transform_indices = @transform_3, window_bounds = array<i64: 32, 64>}, {pipeline_mode = #tpu.pipeline_mode<synchronous>, transform_indices = @transform_4, window_bounds = array<i64: 1, 64>}, {pipeline_mode = #tpu.pipeline_mode<synchronous>, transform_indices = @transform_5, window_bounds = array<i64: 64, 64>}, {pipeline_mode = #tpu.pipeline_mode<synchronous>, transform_indices = @transform_6, window_bounds = array<i64: 1, 64>}, {pipeline_mode = #tpu.pipeline_mode<synchronous>, transform_indices = @transform_7, window_bounds = array<i64: 64, 2>}, {pipeline_mode = #tpu.pipeline_mode<synchronous>, transform_indices = @transform_8, window_bounds = array<i64: 1, 2>}, {transform_indices = @transform_9, window_bounds = array<i64: 1, 128>}, {transform_indices = @transform_10, window_bounds = array<i64: 1, 1, 4>}]} {
    %c0 = arith.constant 0 : index
    %c0_0 = arith.constant 0 : index
    %0 = vector.load %arg2[%c0, %c0_0] : memref<128x32xf32, #tpu.memory_space<vmem>>, vector<128x32xf32>
    %1 = arith.truncf %0 : vector<128x32xf32> to vector<128x32xbf16>
    %c0_1 = arith.constant 0 : index
    %c0_2 = arith.constant 0 : index
    %2 = vector.load %arg4[%c0_1, %c0_2] : memref<32x64xbf16, #tpu.memory_space<vmem>>, vector<32x64xbf16>
    %c0_3 = arith.constant 0 : index
    %c0_4 = arith.constant 0 : index
    %3 = vector.load %arg5[%c0_3, %c0_4] : memref<1x64xf32, #tpu.memory_space<vmem>>, vector<1x64xf32>
    %cst = arith.constant dense<0.000000e+00> : vector<128x64xf32>
    %4 = tpu.matmul %1, %2, %cst {dimension_numbers = #tpu.dot_dimension_numbers<[1], [0], [0], [1], [0, 0, 1, 1], [], []>} : vector<128x32xbf16>, vector<32x64xbf16>, vector<128x64xf32> -> vector<128x64xf32>
    %5 = vector.broadcast %3 : vector<1x64xf32> to vector<128x64xf32>
    %6 = arith.addf %4, %5 : vector<128x64xf32>
    %7 = arith.negf %6 : vector<128x64xf32>
    %8 = math.exp %7 : vector<128x64xf32>
    %cst_5 = arith.constant 1.000000e+00 : f32
    %9 = vector.broadcast %cst_5 : f32 to vector<128x64xf32>
    %10 = arith.addf %9, %8 : vector<128x64xf32>
    %11 = arith.divf %9, %10 : vector<128x64xf32>
    %12 = arith.mulf %6, %11 : vector<128x64xf32>
    %13 = arith.truncf %12 : vector<128x64xf32> to vector<128x64xbf16>
    %c0_6 = arith.constant 0 : index
    %c0_7 = arith.constant 0 : index
    %14 = vector.load %arg6[%c0_6, %c0_7] : memref<64x64xbf16, #tpu.memory_space<vmem>>, vector<64x64xbf16>
    %c0_8 = arith.constant 0 : index
    %c0_9 = arith.constant 0 : index
    %15 = vector.load %arg7[%c0_8, %c0_9] : memref<1x64xf32, #tpu.memory_space<vmem>>, vector<1x64xf32>
    %cst_10 = arith.constant dense<0.000000e+00> : vector<128x64xf32>
    %16 = tpu.matmul %13, %14, %cst_10 {dimension_numbers = #tpu.dot_dimension_numbers<[1], [0], [0], [1], [0, 0, 1, 1], [], []>} : vector<128x64xbf16>, vector<64x64xbf16>, vector<128x64xf32> -> vector<128x64xf32>
    %17 = vector.broadcast %15 : vector<1x64xf32> to vector<128x64xf32>
    %18 = arith.addf %16, %17 : vector<128x64xf32>
    %19 = arith.negf %18 : vector<128x64xf32>
    %20 = math.exp %19 : vector<128x64xf32>
    %cst_11 = arith.constant 1.000000e+00 : f32
    %21 = vector.broadcast %cst_11 : f32 to vector<128x64xf32>
    %22 = arith.addf %21, %20 : vector<128x64xf32>
    %23 = arith.divf %21, %22 : vector<128x64xf32>
    %24 = arith.mulf %18, %23 : vector<128x64xf32>
    %25 = arith.truncf %24 : vector<128x64xf32> to vector<128x64xbf16>
    %c0_12 = arith.constant 0 : index
    %c0_13 = arith.constant 0 : index
    %26 = vector.load %arg8[%c0_12, %c0_13] : memref<64x2xbf16, #tpu.memory_space<vmem>>, vector<64x2xbf16>
    %c0_14 = arith.constant 0 : index
    %c0_15 = arith.constant 0 : index
    %27 = vector.load %arg9[%c0_14, %c0_15] : memref<1x2xf32, #tpu.memory_space<vmem>>, vector<1x2xf32>
    %cst_16 = arith.constant dense<0.000000e+00> : vector<128x2xf32>
    %28 = tpu.matmul %25, %26, %cst_16 {dimension_numbers = #tpu.dot_dimension_numbers<[1], [0], [0], [1], [0, 0, 1, 1], [], []>} : vector<128x64xbf16>, vector<64x2xbf16>, vector<128x2xf32> -> vector<128x2xf32>
    %29 = vector.broadcast %27 : vector<1x2xf32> to vector<128x2xf32>
    %30 = arith.addf %28, %29 : vector<128x2xf32>
    %31 = vector.extract_strided_slice %30 {offsets = [0, 0], sizes = [128, 1], strides = [1, 1]} : vector<128x2xf32> to vector<128x1xf32>
    %32 = tpu.transpose %31, [1, 0] : vector<128x1xf32> -> vector<1x128xf32>
    %33 = vector.extract_strided_slice %30 {offsets = [0, 1], sizes = [128, 1], strides = [1, 1]} : vector<128x2xf32> to vector<128x1xf32>
    %34 = tpu.transpose %33, [1, 0] : vector<128x1xf32> -> vector<1x128xf32>
    %35 = arith.negf %34 : vector<1x128xf32>
    %36 = math.exp %35 : vector<1x128xf32>
    %cst_17 = arith.constant 1.000000e+00 : f32
    %37 = vector.broadcast %cst_17 : f32 to vector<1x128xf32>
    %38 = arith.addf %37, %36 : vector<1x128xf32>
    %39 = arith.divf %37, %38 : vector<1x128xf32>
    %40 = arith.mulf %32, %39 : vector<1x128xf32>
    %c0_18 = arith.constant 0 : index
    %c0_19 = arith.constant 0 : index
    %41 = vector.load %arg3[%c0_18, %c0_19] : memref<1x128xf32, #tpu.memory_space<vmem>>, vector<1x128xf32>
    %cst_20 = arith.constant 4.000000e-01 : f32
    %42 = vector.broadcast %cst_20 : f32 to vector<1x128xf32>
    %43 = arith.mulf %41, %42 : vector<1x128xf32>
    %44 = arith.addf %43, %40 : vector<1x128xf32>
    %45 = tpu.iota {dimensions = array<i32: 1>} : vector<1x128xi32>
    %c128_i32 = arith.constant 128 : i32
    %46 = arith.muli %arg0, %c128_i32 : i32
    %c200_i32 = arith.constant 200 : i32
    %47 = arith.subi %c200_i32, %46 : i32
    %48 = vector.broadcast %47 : i32 to vector<1x128xi32>
    %49 = arith.cmpi slt, %45, %48 : vector<1x128xi32>
    %cst_21 = arith.constant 0.000000e+00 : f32
    %50 = vector.broadcast %cst_21 : f32 to vector<1x128xf32>
    %51 = arith.select %49, %44, %50 : vector<1x128xi1>, vector<1x128xf32>
    %c0_22 = arith.constant 0 : index
    %c0_23 = arith.constant 0 : index
    %52 = vector.load %arg10[%c0_22, %c0_23] : memref<1x128xf32, #tpu.memory_space<vmem>>, vector<1x128xf32>
    tpu.vector_store %arg10[%c0_22, %c0_23], %51 {strides = array<i32>} : memref<1x128xf32, #tpu.memory_space<vmem>>, vector<1x128xf32>,
    %53 = tpu.iota {dimensions = array<i32: 0>} : vector<4x128xi32>
    %c0_24 = arith.constant 0 : index
    %c0_25 = arith.constant 0 : index
    %54 = vector.load %arg1[%c0_24, %c0_25] : memref<1x128xi32, #tpu.memory_space<vmem>>, vector<1x128xi32>
    %55 = vector.broadcast %54 : vector<1x128xi32> to vector<4x128xi32>
    %56 = arith.cmpi eq, %53, %55 : vector<4x128xi32>
    %cst_26 = arith.constant 0.000000e+00 : f32
    %57 = vector.shape_cast %51 : vector<1x128xf32> to vector<1x128xf32>
    %58 = vector.broadcast %57 : vector<1x128xf32> to vector<4x128xf32>
    %59 = vector.broadcast %cst_26 : f32 to vector<4x128xf32>
    %60 = arith.select %56, %58, %59 : vector<4x128xi1>, vector<4x128xf32>
    %cst_27 = arith.constant dense<0.000000e+00> : vector<4xf32>
    %61 = vector.multi_reduction <add>, %60, %cst_27 [1] : vector<4x128xf32> to vector<4xf32>
    %62 = vector.shape_cast %61 : vector<4xf32> to vector<1x1x4xf32>
    %c0_28 = arith.constant 0 : index
    %c0_29 = arith.constant 0 : index
    %c0_30 = arith.constant 0 : index
    %63 = vector.load %arg11[%c0_28, %c0_29, %c0_30] : memref<1x1x4xf32, #tpu.memory_space<vmem>>, vector<1x1x4xf32>
    tpu.vector_store %arg11[%c0_28, %c0_29, %c0_30], %62 {strides = array<i32>} : memref<1x1x4xf32, #tpu.memory_space<vmem>>, vector<1x1x4xf32>,
    return
  }
  func.func @transform_0(%arg0: i32) -> (i32, i32) {
    %c0_i32 = arith.constant 0 : i32
    %c0_i32_0 = arith.constant 0 : i32
    return %c0_i32, %arg0 : i32, i32
  }
  func.func @transform_1(%arg0: i32) -> (i32, i32) {
    %c0_i32 = arith.constant 0 : i32
    %c0_i32_0 = arith.constant 0 : i32
    return %arg0, %c0_i32 : i32, i32
  }
  func.func @transform_2(%arg0: i32) -> (i32, i32) {
    %c0_i32 = arith.constant 0 : i32
    %c0_i32_0 = arith.constant 0 : i32
    return %c0_i32, %arg0 : i32, i32
  }
  func.func @transform_3(%arg0: i32) -> (i32, i32) {
    %c0_i32 = arith.constant 0 : i32
    %c0_i32_0 = arith.constant 0 : i32
    %c0_i32_1 = arith.constant 0 : i32
    return %c0_i32, %c0_i32_0 : i32, i32
  }
  func.func @transform_4(%arg0: i32) -> (i32, i32) {
    %c0_i32 = arith.constant 0 : i32
    %c0_i32_0 = arith.constant 0 : i32
    %c0_i32_1 = arith.constant 0 : i32
    return %c0_i32, %c0_i32_0 : i32, i32
  }
  func.func @transform_5(%arg0: i32) -> (i32, i32) {
    %c0_i32 = arith.constant 0 : i32
    %c0_i32_0 = arith.constant 0 : i32
    %c0_i32_1 = arith.constant 0 : i32
    return %c0_i32, %c0_i32_0 : i32, i32
  }
  func.func @transform_6(%arg0: i32) -> (i32, i32) {
    %c0_i32 = arith.constant 0 : i32
    %c0_i32_0 = arith.constant 0 : i32
    %c0_i32_1 = arith.constant 0 : i32
    return %c0_i32, %c0_i32_0 : i32, i32
  }
  func.func @transform_7(%arg0: i32) -> (i32, i32) {
    %c0_i32 = arith.constant 0 : i32
    %c0_i32_0 = arith.constant 0 : i32
    %c0_i32_1 = arith.constant 0 : i32
    return %c0_i32, %c0_i32_0 : i32, i32
  }
  func.func @transform_8(%arg0: i32) -> (i32, i32) {
    %c0_i32 = arith.constant 0 : i32
    %c0_i32_0 = arith.constant 0 : i32
    %c0_i32_1 = arith.constant 0 : i32
    return %c0_i32, %c0_i32_0 : i32, i32
  }
  func.func @transform_9(%arg0: i32) -> (i32, i32) {
    %c0_i32 = arith.constant 0 : i32
    %c0_i32_0 = arith.constant 0 : i32
    return %c0_i32, %arg0 : i32, i32
  }
  func.func @transform_10(%arg0: i32) -> (i32, i32, i32) {
    %c0_i32 = arith.constant 0 : i32
    %c0_i32_0 = arith.constant 0 : i32
    %c0_i32_1 = arith.constant 0 : i32
    return %arg0, %c0_i32, %c0_i32_0 : i32, i32, i32
  }
}

</mosaic_0001>

<bundles_post_ra>
// kernel: tpu_custom_call.1
= control target key start
LH: loop header
LB: loop body
LE: loop exit
PB: predicated region body
PF: predicated region fallthrough
CT: control target
= control target key end

     0   :  { %s2683_s0 = inlined_call_operand.vmem [shape: s32[1,200], index: 0, kind: input, shape index: {}]   ;;  %s2684_s1 = inlined_call_operand.vmem [shape: f32[200,32], index: 1, kind: input, shape index: {}]   ;;  %s2685_s2 = inlined_call_operand.vmem [shape: f32[1,200], index: 2, kind: input, shape index: {}]   ;;  %s2686_s3 = inlined_call_operand.vmem [shape: bf16[32,64], index: 3, kind: input, shape index: {}]   ;;  %s2687_s4 = inlined_call_operand.vmem [shape: f32[1,64], index: 4, kind: input, shape index: {}]   ;;  %s2688_s5 = inlined_call_operand.vmem [shape: bf16[64,64], index: 5, kind: input, shape index: {}]   ;;  %s2689_s6 = inlined_call_operand.vmem [shape: f32[1,64], index: 6, kind: input, shape index: {}]   ;;  %s2690_s7 = inlined_call_operand.vmem [shape: bf16[64,2], index: 7, kind: input, shape index: {}]   ;;  %s2691_s8 = inlined_call_operand.vmem [shape: f32[1,2], index: 8, kind: input, shape index: {}]   ;;  %s2692_s9 = inlined_call_operand.hbm [shape: f32[1,200], index: 9, kind: output, shape index: {0}]   ;;  %s2693_s10 = inlined_call_operand.hbm [shape: f32[2,1,4], index: 10, kind: output, shape index: {1}]  }
   0x1   :  { %2694 = sst [smem:[#allocation8_spill]] %s2684_s1 }
   0x2   :  { %16 = vsyncpa [#allocation3], 0 }
   0x3   :  { %18 = vsyncpa [#allocation3 + $0x1], 0 }
   0x4   :  { %19 = vsyncpa [#allocation5], 0 }
   0x5   :  { %21 = vsyncpa [#allocation5 + $0x1], 0  ;;  %s2176_s13 = smov 0   ;;  %s2178_s14 = smov 0  }
   0x6   :  { %s2180_s15 = smov 0   ;;  %s2182_s16 = smov 0  }
   0x7 LB: > { %s2197_s17 = sadd.s32 4294967295, %s2118_s16   ;;  %s1717_s18 = sadd.s32 4294967294, %s2118_s16   ;;  %s2118_s16 = sphi %s2182_s16, %s2715_s16   ;;  %s2114_s15 = sphi %s2180_s15, %s2714_s15   ;;  %s2110_s14 = sphi %s2178_s14, %s2713_s14   ;;  %s2106_s13 = sphi %s2176_s13, %s2712_s13  }
   0x8   : > { %s2201_s19 = sadd.s32 1, %s2118_s16   ;;  %s238_s20 = sadd.s32 1, %s2114_s15 }
   0x9   : > { %s235_s21 = ssub.s32 %s2118_s16, %s2201_s19  ;;  %p248_p0 = scmp.ne.s32.totalorder %s2114_s15, %s2110_s14 }
   0xa   : > { %p236_p1 = scmp.eq.s32.totalorder %s235_s21, 0  ;;  %p249_p2 = scmp.eq.s32.totalorder %s2197_s17, 1 }
   0xb   : > { %p254_p3 = scmp.ne.s32.totalorder %s2110_s14, %s2106_s13  ;;  %p255_p4 = scmp.eq.s32.totalorder %s1717_s18, 1 }
   0xc   : > { %s2212_s22 = scalar_select %p236_p1, %s2114_s15, %s238_s20  }
   0xd   : > { %p2214_p5 = por %p249_p2, %p248_p0  ;;  %p2218_p6 = por %p255_p4, %p254_p3 }
   0xe   : > { %p1720_p7 = scmp.ge.s32.totalorder %s2118_s16, 1  ;;  %p346_p8 = scmp.lt.s32.totalorder %s2118_s16, 3 }
  0x10   : > { %p347_p9 = pnand %p1720_p7, %p346_p8 }
  0x11   : > { %s1721_s27 = sshll.u32 (!%p347_p9), %s2197_s17, 4  ;;  %s2697_s1 = sld [smem:[#allocation8_spill]] (!%p347_p9) }
  0x12   : > { %350 = sbr.rel (%p347_p9) target bundleno = 995 (0x3e3), region = 56  ;;  %p405_p10 = scmp.lt.s32.totalorder (!%p347_p9), %s1721_s27, 24 }
  0x13   : > { %s2120_s20 = smov (!%p347_p9), 127   ;;  %p397_p11 = scmp.lt.s32.totalorder (!%p347_p9), %s2197_s17, 1 }
  0x14   : > { %s1820_s11 = sshll.u32 (!%p347_p9), %s2197_s17, 7  ;;  %s1599_s26 = scalar_lea.hbm (!%p347_p9), %s2692_s9, %s2197_s17 }
  0x15   : > { %s1565_s12 = ssub.s32 (!%p347_p9), 200, %s1820_s11 }
  0x17   : > { %v1824_v0 = vld [vmem:[%s2686_s3 + $0x8] sm:$0xff]  ;;  %v1823_v1 = vld [vmem:[%s2686_s3] sm:$0xff]  ;;  %s2717_s27 = smov (!%p405_p10, %s1721_s27), 24  ;;  %vm462_vm0 = vcmask 261120   ;;  %v1828_v26 = vld [vmem:[%s2688_s5 + $0x18] sm:$0xff]  ;;  %vm900_vm9 = vcmask 523264  }
  0x18   : > { %493 = vmatpush.bf16.msra.mxu0 %v1824_v0  ;;  %1833 = vmatpush.bf16.msra.mxu3 %v1824_v0  ;;  %s1722_s30 = sshll.u32 %s2717_s27, 3  ;;  %v2266_v27 = vld [vmem:[%s2687_s4] ss:$0 sm:$0xff]  ;;  %v1827_v28 = vld [vmem:[%s2688_s5 + $0x10] sm:$0xff]  ;;  %v1826_v32 = vld [vmem:[%s2688_s5 + $0x8] sm:$0xff] }
  0x19   : > { %s2234_s18 = scalar_lea.vmem %s2697_s1, %s1722_s30  ;;  %929 = vmatpush.bf16.msra.mxu1 %v1828_v26  ;;  %v1825_v33 = vld [vmem:[%s2688_s5] sm:$0xff]  ;;  %s1603_s1 = sshll.u32 %s1599_s26, 4  ;;  %s1604_s1 = int_to_ptr.hbm [resolvable:$true] %s1603_s1 }
  0x1a   : > { %v418_v2 = vld [vmem:[%s2234_s18] sm:$0xff]  ;;  %v419_v3 = vld [vmem:[%s2234_s18 + $0x8] sm:$0xff]  ;;  %v420_v5 = vld [vmem:[%s2234_s18 + $0x10] sm:$0xff]  ;;  %s2613_s21 = scalar_select %p397_p11, %s2197_s17, 1 }
  0x1b   : > { %v434_v4 = vpack.c.bf16 %v419_v3, %v418_v2  ;;  %v421_v6 = vld [vmem:[%s2234_s18 + $0x18] sm:$0xff]  ;;  %v422_v8 = vld [vmem:[%s2234_s18 + $0x20] sm:$0xff]  ;;  %v423_v9 = vld [vmem:[%s2234_s18 + $0x28] sm:$0xff]  ;;  %s2044_s26 = scalar_lea.hbm %s2692_s9, 2 }
  0x1c   : > { %494 = vmatpush.bf16.msra.mxu0 %v1823_v1  ;;  %1834 = vmatpush.bf16.msra.mxu3 %v1823_v1  ;;  %v435_v7 = vpack.c.bf16 %v421_v6, %v420_v5  ;;  %v436_v10 = vpack.c.bf16 %v423_v9, %v422_v8  ;;  %v432_v11 = vld [vmem:[%s2234_s18 + $0x70] sm:$0xff]  ;;  %v433_v12 = vld [vmem:[%s2234_s18 + $0x78] sm:$0xff]  ;;  %v426_v17 = vld [vmem:[%s2234_s18 + $0x40] sm:$0xff]  ;;  %s399_s27 = scalar_lea.vmem %s2683_s0, %s2613_s21  ;;  %s416_s30 = scalar_lea.vmem %s2685_s2, %s2613_s21 }
  0x1d   : > { %v441_v13 = vpack.c.bf16 %v433_v12, %v432_v11  ;;  %v424_v14 = vld [vmem:[%s2234_s18 + $0x30] sm:$0xff]  ;;  %v425_v15 = vld [vmem:[%s2234_s18 + $0x38] sm:$0xff]  ;;  %v427_v18 = vld [vmem:[%s2234_s18 + $0x48] sm:$0xff]  ;;  %930 = vmatpush.bf16.msra.mxu1 %v1827_v28 }
  0x1e   : > { %v437_v16 = vpack.c.bf16 %v425_v15, %v424_v14  ;;  %v438_v19 = vpack.c.bf16 %v427_v18, %v426_v17  ;;  %v428_v20 = vld [vmem:[%s2234_s18 + $0x50] sm:$0xff]  ;;  %v429_v21 = vld [vmem:[%s2234_s18 + $0x58] sm:$0xff]  ;;  %v430_v23 = vld [vmem:[%s2234_s18 + $0x60] sm:$0xff] }
  0x1f   : > { %1731 = vmatmul.msk.bf16.vlgmr.msra.gmra.mxu0 %vm462_vm0, %v434_v4  ;;  %1738 = vmatmul.msk.bf16.vlgmr.msra.gmra.mxu3 %vm462_vm0, %v441_v13  ;;  %v439_v22 = vpack.c.bf16 %v429_v21, %v428_v20  ;;  %v431_v24 = vld [vmem:[%s2234_s18 + $0x68] sm:$0xff]  ;;  %s2625_s18 = sand.u32 1, %s2110_s14  }
  0x20   : > { %v440_v25 = vpack.c.bf16 %v431_v24, %v430_v23  ;;  %1835 = vmatpush.bf16.msrb.mxu3 %v1828_v26 }
  0x21   : > { %931 = vmatpush.bf16.msra.mxu1 %v1826_v32 }
  0x24   : > { %1836 = vmatpush.bf16.msrb.mxu3 %v1827_v28 }
  0x25   : > { %932 = vmatpush.bf16.msra.mxu1 %v1825_v33 }
  0x28   : > { %1837 = vmatpush.bf16.msrb.mxu3 %v1826_v32 }
  0x2c   : > { %1838 = vmatpush.bf16.msrb.mxu3 %v1825_v33 }
  0x2f   : > { %1732 = vmatmul.msk.bf16.gmra.mxu0 %vm462_vm0, %v435_v7 }
  0x3f   : > { %1733 = vmatmul.msk.bf16.gmra.mxu0 %vm462_vm0, %v436_v10 }
  0x4f   : > { %1734 = vmatmul.msk.bf16.gmra.mxu0 %vm462_vm0, %v437_v16 }
  0x5f   : > { %1735 = vmatmul.msk.bf16.gmra.mxu0 %vm462_vm0, %v438_v19 }
  0x6f   : > { %1736 = vmatmul.msk.bf16.gmra.mxu0 %vm462_vm0, %v439_v22 }
  0x7f   : > { %1737 = vmatmul.msk.bf16.gmra.mxu0 %vm462_vm0, %v440_v25 }
  0x9c   : > { %v496_v29 = vpop.f32.mrf.mxu0 }
  0x9d   : > { %v2272_v30 = vadd.f32 %v2266_v27, %v496_v29 }
  0x9f   : > { %v1739_v31 = vmul.f32 -1.442695, %v2272_v30 }
  0xa1   : > { %1892 = vpow2.f32 %v1739_v31 }
  0xa4   : > { %v498_v34 = vpop.f32.mrf.mxu0 }
  0xa5   : > { %v499_v35 = vadd.f32 %v2266_v27, %v498_v34 }
  0xa7   : > { %v1893_v36 = vpop.eup %1892  ;;  %v1740_v37 = vmul.f32 -1.442695, %v499_v35 }
  0xa8   : > { %v584_v38 = vadd.f32 1.0, %v1893_v36 }
  0xa9   : > { %1894 = vpow2.f32 %v1740_v37 }
  0xaa   : > { %1896 = vrcp.f32 %v584_v38  ;;  %v611_v56 = vand.u32 2147483648, %v584_v38  ;;  %vm605_vm2 = vweird.f32 %v584_v38  ;;  %v609_v57 = vand.u32 2147483647, %v584_v38 }
  0xac   : > { %v501_v39 = vpop.f32.mrf.mxu0  ;;  %v612_v2 = vor.u32 1.1754944e-38, %v611_v56  ;;  %vm610_vm5 = vcmp.eq.f32.partialorder %v609_v57, 8.507059e+37 }
  0xad   : > { %v2283_v40 = vadd.f32 %v2266_v27, %v501_v39 }
  0xaf   : > { %v1895_v41 = vpop.eup %1894  ;;  %v1741_v42 = vmul.f32 -1.442695, %v2283_v40 }
  0xb0   : > { %v1897_v43 = vpop.eup %1896  ;;  %v585_v44 = vadd.f32 1.0, %v1895_v41 }
  0xb1   : > { %v601_v45 = vmul.f32 %v1897_v43, %v584_v38  ;;  %1898 = vpow2.f32 %v1741_v42  ;;  %vm606_vm1 = vweird.f32 %v1897_v43 }
  0xb2   : > { %1900 = vrcp.f32 %v585_v44  ;;  %vm2293_vm3 = vmor %vm605_vm2, %vm606_vm1  ;;  %v624_v60 = vand.u32 2147483647, %v585_v44  ;;  %v626_v61 = vand.u32 2147483648, %v585_v44  ;;  %vm620_vm6 = vweird.f32 %v585_v44 }
  0xb3   : > { %v602_v46 = vsub.f32 1.0, %v601_v45 }
  0xb4   : > { %v503_v47 = vpop.f32.mrf.mxu0  ;;  %v627_v8 = vor.u32 1.1754944e-38, %v626_v61  ;;  %vm625_vm8 = vcmp.eq.f32.partialorder %v624_v60, 8.507059e+37 }
  0xb5   : > { %v603_v48 = vmul.f32 %v1897_v43, %v602_v46  ;;  %v2287_v49 = vadd.f32 %v2266_v27, %v503_v47 }
  0xb7   : > { %v1899_v50 = vpop.eup %1898  ;;  %v1742_v51 = vmul.f32 -1.442695, %v2287_v49  ;;  %v604_v54 = vadd.f32 %v1897_v43, %v603_v48 }
  0xb8   : > { %v1901_v52 = vpop.eup %1900  ;;  %v2290_v53 = vadd.f32 1.0, %v1899_v50 }
  0xb9   : > { %v616_v55 = vmul.f32 %v1901_v52, %v585_v44  ;;  %1902 = vpow2.f32 %v1742_v51  ;;  %v608_v63 = vsel %vm2293_vm3, %v1897_v43, %v604_v54  ;;  %vm621_vm4 = vweird.f32 %v1901_v52 }
  0xba   : > { %1904 = vrcp.f32 %v2290_v53  ;;  %v613_v7 = vsel %vm610_vm5, %v612_v2, %v608_v63  ;;  %vm622_vm7 = vmor %vm620_vm6, %vm621_vm4  ;;  %v641_v26 = vand.u32 2147483648, %v2290_v53  ;;  %vm635_vm11 = vweird.f32 %v2290_v53 }
  0xbb   : > { %v617_v58 = vsub.f32 1.0, %v616_v55  ;;  %v840_v13 = vmul.f32 %v613_v7, %v2272_v30  ;;  %v639_v28 = vand.u32 2147483647, %v2290_v53 }
  0xbc   : > { %v506_v62 = vpop.f32.mrf.mxu0  ;;  %v642_v37 = vor.u32 1.1754944e-38, %v641_v26 }
  0xbd   : > { %v618_v0 = vmul.f32 %v1901_v52, %v617_v58  ;;  %v2300_v1 = vadd.f32 %v2266_v27, %v506_v62  ;;  %vm640_vm14 = vcmp.eq.f32.partialorder %v639_v28, 8.507059e+37 }
  0xbf   : > { %v1903_v3 = vpop.eup %1902  ;;  %v619_v4 = vadd.f32 %v1901_v52, %v618_v0  ;;  %v1743_v5 = vmul.f32 -1.442695, %v2300_v1 }
  0xc0   : > { %v1905_v6 = vpop.eup %1904  ;;  %v587_v9 = vadd.f32 1.0, %v1903_v3 }
  0xc1   : > { %v623_v10 = vsel %vm622_vm7, %v1901_v52, %v619_v4  ;;  %v631_v11 = vmul.f32 %v1905_v6, %v2290_v53  ;;  %1906 = vpow2.f32 %v1743_v5  ;;  %vm636_vm10 = vweird.f32 %v1905_v6 }
  0xc2   : > { %v628_v12 = vsel %vm625_vm8, %v627_v8, %v623_v10  ;;  %1908 = vrcp.f32 %v587_v9  ;;  %vm2316_vm12 = vmor %vm635_vm11, %vm636_vm10  ;;  %v654_v31 = vand.u32 2147483647, %v587_v9  ;;  %v656_v32 = vand.u32 2147483648, %v587_v9 }
  0xc3   : > { %v841_v14 = vmul.f32 %v628_v12, %v499_v35  ;;  %v632_v15 = vsub.f32 1.0, %v631_v11  ;;  %vm650_vm15 = vweird.f32 %v587_v9 }
  0xc4   : > { %v508_v16 = vpop.f32.mrf.mxu0  ;;  %v657_v44 = vor.u32 1.1754944e-38, %v656_v32  ;;  %vm655_vm1 = vcmp.eq.f32.partialorder %v654_v31, 8.507059e+37 }
  0xc5   : > { %v633_v17 = vmul.f32 %v1905_v6, %v632_v15  ;;  %v2306_v18 = vadd.f32 %v2266_v27, %v508_v16  ;;  %v856_v19 = vpack.c.bf16 %v841_v14, %v840_v13 }
  0xc7   : > { %v1907_v20 = vpop.eup %1906  ;;  %v1744_v21 = vmul.f32 -1.442695, %v2306_v18  ;;  %1771 = vmatmul.msk.bf16.vlgmr.msra.gmra.mxu1 %vm900_vm9, %v856_v19  ;;  %v634_v24 = vadd.f32 %v1905_v6, %v633_v17 }
  0xc8   : > { %v1909_v22 = vpop.eup %1908  ;;  %v2310_v23 = vadd.f32 1.0, %v1907_v20 }
  0xc9   : > { %v646_v25 = vmul.f32 %v1909_v22, %v587_v9  ;;  %1910 = vpow2.f32 %v1744_v21  ;;  %v638_v34 = vsel %vm2316_vm12, %v1905_v6, %v634_v24  ;;  %vm651_vm13 = vweird.f32 %v1909_v22 }
  0xca   : > { %1912 = vrcp.f32 %v2310_v23  ;;  %v643_v43 = vsel %vm640_vm14, %v642_v37, %v638_v34  ;;  %vm652_vm0 = vmor %vm650_vm15, %vm651_vm13  ;;  %vm665_vm3 = vweird.f32 %v2310_v23  ;;  %v669_v62 = vand.u32 2147483647, %v2310_v23  ;;  %v531_v34 = vpop.f32.mrf.mxu3 }
  0xcb   : > { %v647_v29 = vsub.f32 1.0, %v646_v25  ;;  %v842_v50 = vmul.f32 %v643_v43, %v2283_v40 }
  0xcc   : > { %v511_v33 = vpop.f32.mrf.mxu0  ;;  %vm670_vm6 = vcmp.eq.f32.partialorder %v669_v62, 8.507059e+37 }
  0xcd   : > { %v648_v35 = vmul.f32 %v1909_v22, %v647_v29  ;;  %v2323_v36 = vadd.f32 %v2266_v27, %v511_v33 }
  0xcf   : > { %v1911_v38 = vpop.eup %1910  ;;  %v649_v39 = vadd.f32 %v1909_v22, %v648_v35  ;;  %v1745_v41 = vmul.f32 -1.442695, %v2323_v36 }
  0xd0   : > { %v1913_v42 = vpop.eup %1912  ;;  %v589_v45 = vadd.f32 1.0, %v1911_v38 }
  0xd1   : > { %v653_v46 = vsel %vm652_vm0, %v1909_v22, %v649_v39  ;;  %v661_v47 = vmul.f32 %v1913_v42, %v2310_v23  ;;  %1914 = vpow2.f32 %v1745_v41  ;;  %vm666_vm2 = vweird.f32 %v1913_v42 }
  0xd2   : > { %v658_v48 = vsel %vm655_vm1, %v657_v44, %v653_v46  ;;  %1916 = vrcp.f32 %v589_v45  ;;  %vm2340_vm4 = vmor %vm665_vm3, %vm666_vm2  ;;  %v684_v2 = vand.u32 2147483647, %v589_v45  ;;  %v686_v3 = vand.u32 2147483648, %v589_v45 }
  0xd3   : > { %v843_v51 = vmul.f32 %v658_v48, %v2287_v49  ;;  %v662_v52 = vsub.f32 1.0, %v661_v47  ;;  %v671_v49 = vand.u32 2147483648, %v2310_v23  ;;  %vm680_vm7 = vweird.f32 %v589_v45 }
  0xd4   : > { %v513_v53 = vpop.f32.mrf.mxu0  ;;  %v687_v14 = vor.u32 1.1754944e-38, %v686_v3  ;;  %vm685_vm10 = vcmp.eq.f32.partialorder %v684_v2, 8.507059e+37 }
  0xd5   : > { %v663_v54 = vmul.f32 %v1913_v42, %v662_v52  ;;  %v2330_v55 = vadd.f32 %v2266_v27, %v513_v53  ;;  %v857_v56 = vpack.c.bf16 %v843_v51, %v842_v50  ;;  %v672_v8 = vor.u32 1.1754944e-38, %v671_v49  ;;  %v533_v49 = vpop.f32.mrf.mxu3 }
  0xd7   : > { %v1915_v57 = vpop.eup %1914  ;;  %v1746_v58 = vmul.f32 -1.442695, %v2330_v55  ;;  %1772 = vmatmul.msk.bf16.gmra.mxu1 %vm900_vm9, %v857_v56  ;;  %v664_v61 = vadd.f32 %v1913_v42, %v663_v54 }
  0xd8   : > { %v1917_v59 = vpop.eup %1916  ;;  %v2334_v60 = vadd.f32 1.0, %v1915_v57 }
  0xd9   : > { %v676_v40 = vmul.f32 %v1917_v59, %v589_v45  ;;  %1918 = vpow2.f32 %v1746_v58  ;;  %v668_v5 = vsel %vm2340_vm4, %v1913_v42, %v664_v61  ;;  %vm681_vm5 = vweird.f32 %v1917_v59 }
  0xda   : > { %1920 = vrcp.f32 %v2334_v60  ;;  %v673_v13 = vsel %vm670_vm6, %v672_v8, %v668_v5  ;;  %vm682_vm8 = vmor %vm680_vm7, %vm681_vm5  ;;  %vm695_vm12 = vweird.f32 %v2334_v60  ;;  %v699_v35 = vand.u32 2147483647, %v2334_v60 }
  0xdb   : > { %v677_v63 = vsub.f32 1.0, %v676_v40  ;;  %v844_v20 = vmul.f32 %v673_v13, %v2300_v1 }
  0xdc   : > { %v516_v4 = vpop.f32.mrf.mxu0  ;;  %vm700_vm0 = vcmp.eq.f32.partialorder %v699_v35, 8.507059e+37 }
  0xdd   : > { %v678_v6 = vmul.f32 %v1917_v59, %v677_v63  ;;  %v2347_v7 = vadd.f32 %v2266_v27, %v516_v4  ;;  %v2381_v63 = vadd.f32 %v2266_v27, %v531_v34  ;;  %v2385_v4 = vadd.f32 %v2266_v27, %v533_v49 }
  0xdf   : > { %v1919_v9 = vpop.eup %1918  ;;  %v679_v10 = vadd.f32 %v1917_v59, %v678_v6  ;;  %v1747_v11 = vmul.f32 -1.442695, %v2347_v7  ;;  %v1753_v8 = vmul.f32 -1.442695, %v2381_v63 }
  0xe0   : > { %v1921_v12 = vpop.eup %1920  ;;  %v591_v15 = vadd.f32 1.0, %v1919_v9 }
  0xe1   : > { %v683_v16 = vsel %vm682_vm8, %v1917_v59, %v679_v10  ;;  %v691_v17 = vmul.f32 %v1921_v12, %v2334_v60  ;;  %1922 = vpow2.f32 %v1747_v11  ;;  %vm696_vm11 = vweird.f32 %v1921_v12 }
  0xe2   : > { %v688_v19 = vsel %vm685_vm10, %v687_v14, %v683_v16  ;;  %1924 = vrcp.f32 %v591_v15  ;;  %v716_v37 = vand.u32 2147483648, %v591_v15  ;;  %vm2364_vm13 = vmor %vm695_vm12, %vm696_vm11  ;;  %v714_v42 = vand.u32 2147483647, %v591_v15 }
  0xe3   : > { %v845_v21 = vmul.f32 %v688_v19, %v2306_v18  ;;  %v692_v22 = vsub.f32 1.0, %v691_v17  ;;  %v701_v18 = vand.u32 2147483648, %v2334_v60  ;;  %vm710_vm15 = vweird.f32 %v591_v15 }
  0xe4   : > { %v518_v23 = vpop.f32.mrf.mxu0  ;;  %v717_v50 = vor.u32 1.1754944e-38, %v716_v37  ;;  %vm715_vm2 = vcmp.eq.f32.partialorder %v714_v42, 8.507059e+37 }
  0xe5   : > { %v2354_v24 = vadd.f32 %v2266_v27, %v518_v23  ;;  %v858_v25 = vpack.c.bf16 %v845_v21, %v844_v20  ;;  %v693_v26 = vmul.f32 %v1921_v12, %v692_v22  ;;  %v702_v46 = vor.u32 1.1754944e-38, %v701_v18 }
  0xe7   : > { %v1923_v28 = vpop.eup %1922  ;;  %v1748_v29 = vmul.f32 -1.442695, %v2354_v24  ;;  %1773 = vmatmul.msk.bf16.gmra.mxu1 %vm900_vm9, %v858_v25  ;;  %v694_v1 = vadd.f32 %v1921_v12, %v693_v26 }
  0xe8   : > { %v1925_v30 = vpop.eup %1924  ;;  %v2358_v31 = vadd.f32 1.0, %v1923_v28 }
  0xe9   : > { %v706_v32 = vmul.f32 %v1925_v30, %v591_v15  ;;  %1926 = vpow2.f32 %v1748_v29  ;;  %vm711_vm14 = vweird.f32 %v1925_v30  ;;  %v698_v44 = vsel %vm2364_vm13, %v1921_v12, %v694_v1 }
  0xea   : > { %1928 = vrcp.f32 %v2358_v31  ;;  %vm712_vm1 = vmor %vm710_vm15, %vm711_vm14  ;;  %v703_v53 = vsel %vm700_vm0, %v702_v46, %v698_v44  ;;  %v731_v6 = vand.u32 2147483648, %v2358_v31  ;;  %vm725_vm4 = vweird.f32 %v2358_v31 }
  0xeb   : > { %v707_v33 = vsub.f32 1.0, %v706_v32  ;;  %v846_v60 = vmul.f32 %v703_v53, %v2323_v36  ;;  %v729_v9 = vand.u32 2147483647, %v2358_v31  ;;  %v1754_v15 = vmul.f32 -1.442695, %v2385_v4 }
  0xec   : > { %v521_v38 = vpop.f32.mrf.mxu0  ;;  %v732_v20 = vor.u32 1.1754944e-38, %v731_v6 }
  0xed   : > { %v708_v41 = vmul.f32 %v1925_v30, %v707_v33  ;;  %v2369_v43 = vadd.f32 %v2266_v27, %v521_v38  ;;  %vm730_vm7 = vcmp.eq.f32.partialorder %v729_v9, 8.507059e+37 }
  0xef   : > { %v1927_v45 = vpop.eup %1926  ;;  %v709_v47 = vadd.f32 %v1925_v30, %v708_v41  ;;  %v1749_v52 = vmul.f32 -1.442695, %v2369_v43 }
  0xf0   : > { %v1929_v48 = vpop.eup %1928  ;;  %v593_v51 = vadd.f32 1.0, %v1927_v45 }
  0xf1   : > { %v713_v54 = vsel %vm712_vm1, %v1925_v30, %v709_v47  ;;  %v721_v56 = vmul.f32 %v1929_v48, %v2358_v31  ;;  %vm726_vm3 = vweird.f32 %v1929_v48 }
  0xf2   : > { %v718_v57 = vsel %vm715_vm2, %v717_v50, %v713_v54  ;;  %1930 = vrcp.f32 %v593_v51  ;;  %vm2394_vm5 = vmor %vm725_vm4, %vm726_vm3  ;;  %v744_v13 = vand.u32 2147483647, %v593_v51  ;;  %v746_v14 = vand.u32 2147483648, %v593_v51 }
  0xf3   : > { %v847_v58 = vmul.f32 %v718_v57, %v2330_v55  ;;  %v722_v59 = vsub.f32 1.0, %v721_v56  ;;  %1932 = vpow2.f32 %v1749_v52  ;;  %vm740_vm8 = vweird.f32 %v593_v51 }
  0xf4   : > { %v523_v61 = vpop.f32.mrf.mxu0  ;;  %v747_v26 = vor.u32 1.1754944e-38, %v746_v14  ;;  %vm745_vm11 = vcmp.eq.f32.partialorder %v744_v13, 8.507059e+37 }
  0xf5   : > { %v723_v40 = vmul.f32 %v1929_v48, %v722_v59  ;;  %v2378_v62 = vadd.f32 %v2266_v27, %v523_v61  ;;  %v859_v0 = vpack.c.bf16 %v847_v58, %v846_v60 }
  0xf7   : > { %v1750_v2 = vmul.f32 -1.442695, %v2378_v62  ;;  %1774 = vmatmul.msk.bf16.gmra.mxu1 %vm900_vm9, %v859_v0  ;;  %v724_v36 = vadd.f32 %v1929_v48, %v723_v40 }
  0xf8   : > { %v1931_v3 = vpop.eup %1930 }
  0xf9   : > { %v736_v55 = vmul.f32 %v1931_v3, %v593_v51  ;;  %1934 = vpow2.f32 %v1750_v2  ;;  %v1933_v5 = vpop.eup %1932  ;;  %v728_v17 = vsel %vm2394_vm5, %v1929_v48, %v724_v36  ;;  %vm741_vm6 = vweird.f32 %v1931_v3 }
  0xfa   : > { %v2392_v11 = vadd.f32 1.0, %v1933_v5  ;;  %v733_v25 = vsel %vm730_vm7, %v732_v20, %v728_v17  ;;  %vm742_vm10 = vmor %vm740_vm8, %vm741_vm6 }
  0xfb   : > { %v737_v10 = vsub.f32 1.0, %v736_v55  ;;  %v848_v1 = vmul.f32 %v733_v25, %v2347_v7 }
  0xfc   : > { %v526_v16 = vpop.f32.mrf.mxu0  ;;  %1936 = vrcp.f32 %v2392_v11  ;;  %v761_v47 = vand.u32 2147483648, %v2392_v11  ;;  %vm755_vm13 = vweird.f32 %v2392_v11 }
  0xfd   : > { %v738_v19 = vmul.f32 %v1931_v3, %v737_v10  ;;  %v2403_v21 = vadd.f32 %v2266_v27, %v526_v16  ;;  %1938 = vpow2.f32 %v1753_v8 }
  0xfe   : > { %1940 = vpow2.f32 %v1754_v15  ;;  %v762_v58 = vor.u32 1.1754944e-38, %v761_v47 }
  0xff   : > { %v1935_v22 = vpop.eup %1934  ;;  %v739_v23 = vadd.f32 %v1931_v3, %v738_v19  ;;  %v1751_v29 = vmul.f32 -1.442695, %v2403_v21 }
 0x100   : > { %v595_v28 = vadd.f32 1.0, %v1935_v22 }
 0x101   : > { %v743_v30 = vsel %vm742_vm10, %v1931_v3, %v739_v23 }
 0x102   : > { %v748_v31 = vsel %vm745_vm11, %v747_v26, %v743_v30  ;;  %1942 = vrcp.f32 %v595_v28  ;;  %v1937_v32 = vpop.eup %1936  ;;  %v776_v53 = vand.u32 2147483648, %v595_v28  ;;  %v774_v57 = vand.u32 2147483647, %v595_v28 }
 0x103   : > { %v849_v18 = vmul.f32 %v748_v31, %v2354_v24  ;;  %1944 = vpow2.f32 %v1751_v29  ;;  %v751_v33 = vmul.f32 %v1937_v32, %v2392_v11  ;;  %v1939_v35 = vpop.eup %1938  ;;  %vm756_vm12 = vweird.f32 %v1937_v32 }
 0x104   : > { %v528_v34 = vpop.f32.mrf.mxu0  ;;  %v1941_v41 = vpop.eup %1940  ;;  %v2417_v51 = vadd.f32 1.0, %v1939_v35  ;;  %vm757_vm14 = vmor %vm755_vm13, %vm756_vm12  ;;  %vm770_vm1 = vweird.f32 %v595_v28  ;;  %v777_v40 = vor.u32 1.1754944e-38, %v776_v53  ;;  %vm775_vm3 = vcmp.eq.f32.partialorder %v774_v57, 8.507059e+37  ;;  %v1830_v57 = vld [vmem:[%s2690_s7 + $0x8] sm:$0xff] }
 0x105   : > { %v2410_v37 = vadd.f32 %v2266_v27, %v528_v34  ;;  %v860_v38 = vpack.c.bf16 %v849_v18, %v848_v1  ;;  %v752_v39 = vsub.f32 1.0, %v751_v33  ;;  %v759_v27 = vand.u32 2147483647, %v2392_v11 }
 0x106   : > { %v2419_v52 = vadd.f32 1.0, %v1941_v41  ;;  %vm815_vm13 = vweird.f32 %v2417_v51 }
 0x107   : > { %v1752_v42 = vmul.f32 -1.442695, %v2410_v37  ;;  %v753_v45 = vmul.f32 %v1937_v32, %v752_v39  ;;  %1775 = vmatmul.msk.bf16.gmra.mxu1 %vm900_vm9, %v860_v38  ;;  %vm760_vm0 = vcmp.eq.f32.partialorder %v759_v27, 8.507059e+37  ;;  %v821_v39 = vand.u32 2147483648, %v2417_v51 }
 0x108   : > { %v1943_v44 = vpop.eup %1942  ;;  %v836_v41 = vand.u32 2147483648, %v2419_v52 }
 0x109   : > { %v1945_v7 = vpop.eup %1944  ;;  %v766_v24 = vmul.f32 %v1943_v44, %v595_v28  ;;  %1946 = vpow2.f32 %v1752_v42  ;;  %v754_v46 = vadd.f32 %v1937_v32, %v753_v45  ;;  %vm771_vm15 = vweird.f32 %v1943_v44 }
 0x10a   : > { %v596_v48 = vadd.f32 1.0, %v1945_v7  ;;  %vm772_vm2 = vmor %vm770_vm1, %vm771_vm15  ;;  %vm830_vm15 = vweird.f32 %v2419_v52  ;;  %v837_v7 = vor.u32 1.1754944e-38, %v836_v41 }
 0x10b   : > { %v767_v50 = vsub.f32 1.0, %v766_v24  ;;  %v758_v54 = vsel %vm757_vm14, %v1937_v32, %v754_v46 }
 0x10c   : > { %1948 = vrcp.f32 %v596_v48  ;;  %v763_v61 = vsel %vm760_vm0, %v762_v58, %v758_v54  ;;  %v791_v16 = vand.u32 2147483648, %v596_v48  ;;  %vm785_vm5 = vweird.f32 %v596_v48 }
 0x10d   : > { %v768_v56 = vmul.f32 %v1943_v44, %v767_v50  ;;  %1950 = vrcp.f32 %v2417_v51  ;;  %v850_v36 = vmul.f32 %v763_v61, %v2369_v43  ;;  %v789_v43 = vand.u32 2147483647, %v596_v48 }
 0x10e   : > { %1952 = vrcp.f32 %v2419_v52  ;;  %v792_v26 = vor.u32 1.1754944e-38, %v791_v16 }
 0x10f   : > { %v1947_v59 = vpop.eup %1946  ;;  %v769_v60 = vadd.f32 %v1943_v44, %v768_v56  ;;  %vm790_vm8 = vcmp.eq.f32.partialorder %v789_v43, 8.507059e+37 }
 0x110   : > { %v597_v49 = vadd.f32 1.0, %v1947_v59 }
 0x111   : > { %v773_v0 = vsel %vm772_vm2, %v1943_v44, %v769_v60  ;;  %v819_v44 = vand.u32 2147483647, %v2417_v51  ;;  %v1829_v60 = vld [vmem:[%s2690_s7] sm:$0xff] }
 0x112   : > { %v1949_v2 = vpop.eup %1948  ;;  %v778_v3 = vsel %vm775_vm3, %v777_v40, %v773_v0  ;;  %1954 = vrcp.f32 %v597_v49  ;;  %v806_v19 = vand.u32 2147483648, %v597_v49  ;;  %v804_v23 = vand.u32 2147483647, %v597_v49 }
 0x113   : > { %v851_v55 = vmul.f32 %v778_v3, %v2378_v62  ;;  %v781_v5 = vmul.f32 %v1949_v2, %v596_v48  ;;  %v1951_v9 = vpop.eup %1950  ;;  %vm786_vm4 = vweird.f32 %v1949_v2  ;;  %vm800_vm10 = vweird.f32 %v597_v49 }
 0x114   : > { %v1953_v10 = vpop.eup %1952  ;;  %v811_v15 = vmul.f32 %v1951_v9, %v2417_v51  ;;  %vm787_vm6 = vmor %vm785_vm5, %vm786_vm4  ;;  %v807_v31 = vor.u32 1.1754944e-38, %v806_v19  ;;  %vm805_vm12 = vcmp.eq.f32.partialorder %v804_v23, 8.507059e+37  ;;  %vm816_vm14 = vweird.f32 %v1951_v9  ;;  %v2443_v51 = vld [vmem:[%s2689_s6] ss:$0 sm:$0xff] }
 0x115   : > { %v782_v6 = vsub.f32 1.0, %v781_v5  ;;  %v861_v8 = vpack.c.bf16 %v851_v55, %v850_v36  ;;  %v826_v17 = vmul.f32 %v1953_v10, %v2419_v52  ;;  %vm831_vm0 = vweird.f32 %v1953_v10  ;;  %vm817_vm1 = vmor %vm815_vm13, %vm816_vm14 }
 0x116   : > { %v812_v25 = vsub.f32 1.0, %v811_v15  ;;  %vm832_vm2 = vmor %vm830_vm15, %vm831_vm0  ;;  %vm820_vm3 = vcmp.eq.f32.partialorder %v819_v44, 8.507059e+37 }
 0x117   : > { %v783_v11 = vmul.f32 %v1949_v2, %v782_v6  ;;  %1776 = vmatmul.msk.bf16.gmra.mxu1 %vm900_vm9, %v861_v8  ;;  %v827_v28 = vsub.f32 1.0, %v826_v17 }
 0x118   : > { %v1955_v12 = vpop.eup %1954  ;;  %v813_v18 = vmul.f32 %v1951_v9, %v812_v25 }
 0x119   : > { %v784_v13 = vadd.f32 %v1949_v2, %v783_v11  ;;  %v796_v14 = vmul.f32 %v1955_v12, %v597_v49  ;;  %vm801_vm7 = vweird.f32 %v1955_v12  ;;  %v828_v33 = vmul.f32 %v1953_v10, %v827_v28 }
 0x11a   : > { %vm802_vm11 = vmor %vm800_vm10, %vm801_vm7  ;;  %v814_v42 = vadd.f32 %v1951_v9, %v813_v18 }
 0x11b   : > { %v797_v62 = vsub.f32 1.0, %v796_v14  ;;  %v788_v20 = vsel %vm787_vm6, %v1949_v2, %v784_v13  ;;  %v829_v45 = vadd.f32 %v1953_v10, %v828_v33 }
 0x11c   : > { %v793_v30 = vsel %vm790_vm8, %v792_v26, %v788_v20  ;;  %v818_v24 = vsel %vm817_vm1, %v1951_v9, %v814_v42 }
 0x11d   : > { %v798_v22 = vmul.f32 %v1955_v12, %v797_v62  ;;  %v852_v34 = vmul.f32 %v793_v30, %v2403_v21  ;;  %v834_v21 = vand.u32 2147483647, %v2419_v52  ;;  %v833_v46 = vsel %vm832_vm2, %v1953_v10, %v829_v45  ;;  %v1832_v52 = vld [vmem:[%s2690_s7 + $0x18] sm:$0xff] }
 0x11e   : > { %1366 = vmatpush.bf16.msra.mxu2 %v1832_v52  ;;  %1839 = vmatpush.bf16.msra.mxu3 %v1832_v52 }
 0x11f   : > { %v799_v29 = vadd.f32 %v1955_v12, %v798_v22  ;;  %vm835_vm4 = vcmp.eq.f32.partialorder %v834_v21, 8.507059e+37 }
 0x120   : > { %v838_v48 = vsel %vm835_vm4, %v837_v7, %v833_v46 }
 0x121   : > { %v803_v32 = vsel %vm802_vm11, %v1955_v12, %v799_v29  ;;  %v855_v50 = vmul.f32 %v838_v48, %v2385_v4 }
 0x122   : > { %v808_v1 = vsel %vm805_vm12, %v807_v31, %v803_v32 }
 0x123   : > { %v853_v35 = vmul.f32 %v808_v1, %v2410_v37  ;;  %v822_v37 = vor.u32 1.1754944e-38, %v821_v39 }
 0x125   : > { %v862_v38 = vpack.c.bf16 %v853_v35, %v852_v34  ;;  %v823_v47 = vsel %vm820_vm3, %v822_v37, %v818_v24 }
 0x126   : > { %v854_v27 = vmul.f32 %v823_v47, %v2381_v63  ;;  %v1831_v63 = vld [vmem:[%s2690_s7 + $0x10] sm:$0xff] }
 0x127   : > { %1777 = vmatmul.msk.bf16.vlgmr.msrb.gmra.mxu3 %vm900_vm9, %v862_v38  ;;  %1367 = vmatpush.bf16.msra.mxu2 %v1831_v63 }
 0x128   : > { %v863_v53 = vpack.c.bf16 %v855_v50, %v854_v27  ;;  %1840 = vmatpush.bf16.msra.mxu3 %v1831_v63 }
 0x12b   : > { %1368 = vmatpush.bf16.msra.mxu2 %v1830_v57 }
 0x12c   : > { %1841 = vmatpush.bf16.msra.mxu3 %v1830_v57 }
 0x12f   : > { %1369 = vmatpush.bf16.msra.mxu2 %v1829_v60 }
 0x130   : > { %1842 = vmatpush.bf16.msra.mxu3 %v1829_v60 }
 0x137   : > { %1778 = vmatmul.msk.bf16.gmra.mxu3 %vm900_vm9, %v863_v53 }
 0x144   : > { %v934_v54 = vpop.f32.mrf.mxu1 }
 0x145   : > { %v2449_v56 = vadd.f32 %v2443_v51, %v934_v54 }
 0x147   : > { %v1779_v4 = vmul.f32 -1.442695, %v2449_v56 }
 0x149   : > { %1956 = vpow2.f32 %v1779_v4 }
 0x14c   : > { %v936_v58 = vpop.f32.mrf.mxu1 }
 0x14d   : > { %v937_v59 = vadd.f32 %v2443_v51, %v936_v58 }
 0x14f   : > { %v1957_v61 = vpop.eup %1956  ;;  %v1780_v40 = vmul.f32 -1.442695, %v937_v59 }
 0x150   : > { %v1022_v49 = vadd.f32 1.0, %v1957_v61 }
 0x151   : > { %1958 = vpow2.f32 %v1780_v40 }
 0x152   : > { %1960 = vrcp.f32 %v1022_v49  ;;  %v1049_v43 = vand.u32 2147483648, %v1022_v49  ;;  %vm1043_vm6 = vweird.f32 %v1022_v49  ;;  %v1047_v62 = vand.u32 2147483647, %v1022_v49 }
 0x154   : > { %v939_v0 = vpop.f32.mrf.mxu1  ;;  %v1050_v30 = vor.u32 1.1754944e-38, %v1049_v43  ;;  %vm1048_vm10 = vcmp.eq.f32.partialorder %v1047_v62, 8.507059e+37 }
 0x155   : > { %v2463_v2 = vadd.f32 %v2443_v51, %v939_v0 }
 0x157   : > { %v1959_v3 = vpop.eup %1958  ;;  %v1781_v36 = vmul.f32 -1.442695, %v2463_v2 }
 0x158   : > { %v1961_v55 = vpop.eup %1960  ;;  %v1023_v5 = vadd.f32 1.0, %v1959_v3 }
 0x159   : > { %v1039_v6 = vmul.f32 %v1961_v55, %v1022_v49  ;;  %1962 = vpow2.f32 %v1781_v36  ;;  %vm1044_vm5 = vweird.f32 %v1961_v55 }
 0x15a   : > { %1964 = vrcp.f32 %v1023_v5  ;;  %vm2473_vm7 = vmor %vm1043_vm6, %vm1044_vm5  ;;  %v1062_v22 = vand.u32 2147483647, %v1023_v5  ;;  %v1064_v23 = vand.u32 2147483648, %v1023_v5  ;;  %vm1058_vm11 = vweird.f32 %v1023_v5 }
 0x15b   : > { %v1040_v8 = vsub.f32 1.0, %v1039_v6 }
 0x15c   : > { %v941_v9 = vpop.f32.mrf.mxu1  ;;  %v1065_v34 = vor.u32 1.1754944e-38, %v1064_v23  ;;  %vm1063_vm13 = vcmp.eq.f32.partialorder %v1062_v22, 8.507059e+37 }
 0x15d   : > { %v1041_v10 = vmul.f32 %v1961_v55, %v1040_v8  ;;  %v2467_v11 = vadd.f32 %v2443_v51, %v941_v9 }
 0x15f   : > { %v1963_v12 = vpop.eup %1962  ;;  %v1782_v13 = vmul.f32 -1.442695, %v2467_v11  ;;  %v1042_v16 = vadd.f32 %v1961_v55, %v1041_v10 }
 0x160   : > { %v1965_v14 = vpop.eup %1964  ;;  %v2470_v15 = vadd.f32 1.0, %v1963_v12 }
 0x161   : > { %v1054_v17 = vmul.f32 %v1965_v14, %v1023_v5  ;;  %1966 = vpow2.f32 %v1782_v13  ;;  %v1046_v26 = vsel %vm2473_vm7, %v1961_v55, %v1042_v16  ;;  %vm1059_vm8 = vweird.f32 %v1965_v14 }
 0x162   : > { %1968 = vrcp.f32 %v2470_v15  ;;  %v1051_v33 = vsel %vm1048_vm10, %v1050_v30, %v1046_v26  ;;  %vm1060_vm12 = vmor %vm1058_vm11, %vm1059_vm8  ;;  %v1079_v52 = vand.u32 2147483648, %v2470_v15  ;;  %vm1073_vm15 = vweird.f32 %v2470_v15 }
 0x163   : > { %v1055_v19 = vsub.f32 1.0, %v1054_v17  ;;  %v1278_v42 = vmul.f32 %v1051_v33, %v2449_v56  ;;  %v1077_v54 = vand.u32 2147483647, %v2470_v15 }
 0x164   : > { %v944_v25 = vpop.f32.mrf.mxu1  ;;  %v1080_v60 = vor.u32 1.1754944e-38, %v1079_v52 }
 0x165   : > { %v1056_v28 = vmul.f32 %v1965_v14, %v1055_v19  ;;  %v2480_v29 = vadd.f32 %v2443_v51, %v944_v25  ;;  %vm1078_vm2 = vcmp.eq.f32.partialorder %v1077_v54, 8.507059e+37 }
 0x167   : > { %v1967_v31 = vpop.eup %1966  ;;  %v1057_v32 = vadd.f32 %v1965_v14, %v1056_v28  ;;  %v1783_v1 = vmul.f32 -1.442695, %v2480_v29 }
 0x168   : > { %v1969_v18 = vpop.eup %1968  ;;  %v1025_v35 = vadd.f32 1.0, %v1967_v31 }
 0x169   : > { %v1061_v38 = vsel %vm1060_vm12, %v1965_v14, %v1057_v32  ;;  %v1069_v39 = vmul.f32 %v1969_v18, %v2470_v15  ;;  %1970 = vpow2.f32 %v1783_v1  ;;  %vm1074_vm14 = vweird.f32 %v1969_v18 }
 0x16a   : > { %v1066_v41 = vsel %vm1063_vm13, %v1065_v34, %v1061_v38  ;;  %1972 = vrcp.f32 %v1025_v35  ;;  %vm1075_vm0 = vmor %vm1073_vm15, %vm1074_vm14  ;;  %v1094_v63 = vand.u32 2147483648, %v1025_v35  ;;  %v1092_v58 = vand.u32 2147483647, %v1025_v35 }
 0x16b   : > { %v1279_v44 = vmul.f32 %v1066_v41, %v937_v59  ;;  %v1070_v45 = vsub.f32 1.0, %v1069_v39  ;;  %vm1088_vm3 = vweird.f32 %v1025_v35 }
 0x16c   : > { %v946_v21 = vpop.f32.mrf.mxu1  ;;  %v1095_v36 = vor.u32 1.1754944e-38, %v1094_v63  ;;  %vm1093_vm5 = vcmp.eq.f32.partialorder %v1092_v58, 8.507059e+37 }
 0x16d   : > { %v1071_v37 = vmul.f32 %v1969_v18, %v1070_v45  ;;  %v2486_v7 = vadd.f32 %v2443_v51, %v946_v21  ;;  %v1294_v24 = vpack.c.bf16 %v1279_v44, %v1278_v42 }
 0x16f   : > { %v1971_v46 = vpop.eup %1970  ;;  %v1784_v47 = vmul.f32 -1.442695, %v2486_v7  ;;  %1811 = vmatmul.msk.bf16.vlgmr.msra.gmra.mxu2 %vm900_vm9, %v1294_v24  ;;  %v1072_v50 = vadd.f32 %v1969_v18, %v1071_v37 }
 0x170   : > { %v1973_v48 = vpop.eup %1972  ;;  %v2490_v27 = vadd.f32 1.0, %v1971_v46 }
 0x171   : > { %v1084_v53 = vmul.f32 %v1973_v48, %v1025_v35  ;;  %1974 = vpow2.f32 %v1784_v47  ;;  %v1076_v4 = vsel %vm1075_vm0, %v1969_v18, %v1072_v50  ;;  %vm1089_vm1 = vweird.f32 %v1973_v48 }
 0x172   : > { %1976 = vrcp.f32 %v2490_v27  ;;  %v1081_v3 = vsel %vm1078_vm2, %v1080_v60, %v1076_v4  ;;  %vm1090_vm4 = vmor %vm1088_vm3, %vm1089_vm1  ;;  %vm1103_vm7 = vweird.f32 %v2490_v27  ;;  %v1107_v23 = vand.u32 2147483647, %v2490_v27 }
 0x173   : > { %v1085_v56 = vsub.f32 1.0, %v1084_v53  ;;  %v1280_v10 = vmul.f32 %v1081_v3, %v2463_v2  ;;  %v1109_v2 = vand.u32 2147483648, %v2490_v27 }
 0x174   : > { %v949_v59 = vpop.f32.mrf.mxu1  ;;  %vm1108_vm11 = vcmp.eq.f32.partialorder %v1107_v23, 8.507059e+37 }
 0x175   : > { %v1086_v57 = vmul.f32 %v1973_v48, %v1085_v56  ;;  %v2497_v61 = vadd.f32 %v2443_v51, %v949_v59  ;;  %v1110_v1 = vor.u32 1.1754944e-38, %v1109_v2 }
 0x177   : > { %v1975_v40 = vpop.eup %1974  ;;  %v1087_v49 = vadd.f32 %v1973_v48, %v1086_v57  ;;  %v1785_v5 = vmul.f32 -1.442695, %v2497_v61 }
 0x178   : > { %v1977_v0 = vpop.eup %1976  ;;  %v1027_v55 = vadd.f32 1.0, %v1975_v40 }
 0x179   : > { %v1091_v6 = vsel %vm1090_vm4, %v1973_v48, %v1087_v49  ;;  %v1099_v8 = vmul.f32 %v1977_v0, %v2490_v27  ;;  %vm1104_vm6 = vweird.f32 %v1977_v0 }
 0x17a   : > { %v1096_v9 = vsel %vm1093_vm5, %v1095_v36, %v1091_v6  ;;  %1978 = vrcp.f32 %v1027_v55  ;;  %vm1105_vm8 = vmor %vm1103_vm7, %vm1104_vm6  ;;  %v1124_v26 = vand.u32 2147483648, %v1027_v55  ;;  %v1122_v31 = vand.u32 2147483647, %v1027_v55 }
 0x17b   : > { %v1281_v12 = vmul.f32 %v1096_v9, %v2467_v11  ;;  %v1100_v13 = vsub.f32 1.0, %v1099_v8  ;;  %1980 = vpow2.f32 %v1785_v5  ;;  %vm1118_vm12 = vweird.f32 %v1027_v55 }
 0x17c   : > { %v951_v15 = vpop.f32.mrf.mxu1  ;;  %v1125_v38 = vor.u32 1.1754944e-38, %v1124_v26  ;;  %vm1123_vm14 = vcmp.eq.f32.partialorder %v1122_v31, 8.507059e+37 }
 0x17d   : > { %v1101_v14 = vmul.f32 %v1977_v0, %v1100_v13  ;;  %v1295_v16 = vpack.c.bf16 %v1281_v12, %v1280_v10  ;;  %v2504_v17 = vadd.f32 %v2443_v51, %v951_v15 }
 0x17f   : > { %1812 = vmatmul.msk.bf16.gmra.mxu2 %vm900_vm9, %v1295_v16  ;;  %v1786_v62 = vmul.f32 -1.442695, %v2504_v17  ;;  %v1102_v20 = vadd.f32 %v1977_v0, %v1101_v14 }
 0x180   : > { %v1979_v43 = vpop.eup %1978 }
 0x181   : > { %v1981_v19 = vpop.eup %1980  ;;  %v1114_v22 = vmul.f32 %v1979_v43, %v1027_v55  ;;  %1982 = vpow2.f32 %v1786_v62  ;;  %v1106_v28 = vsel %vm1105_vm8, %v1977_v0, %v1102_v20  ;;  %vm1119_vm10 = vweird.f32 %v1979_v43 }
 0x182   : > { %v1028_v11 = vadd.f32 1.0, %v1981_v19  ;;  %v1111_v35 = vsel %vm1108_vm11, %v1110_v1, %v1106_v28  ;;  %vm1120_vm13 = vmor %vm1118_vm12, %vm1119_vm10 }
 0x183   : > { %v1115_v25 = vsub.f32 1.0, %v1114_v22  ;;  %v1282_v21 = vmul.f32 %v1111_v35, %v2480_v29 }
 0x184   : > { %1984 = vrcp.f32 %v1028_v11  ;;  %v954_v32 = vpop.f32.mrf.mxu1  ;;  %v1139_v63 = vand.u32 2147483648, %v1028_v11  ;;  %vm1133_vm0 = vweird.f32 %v1028_v11  ;;  %v1137_v4 = vand.u32 2147483647, %v1028_v11 }
 0x185   : > { %v1116_v30 = vmul.f32 %v1979_v43, %v1115_v25  ;;  %v2512_v18 = vadd.f32 %v2443_v51, %v954_v32 }
 0x186   : > { %v1140_v36 = vor.u32 1.1754944e-38, %v1139_v63  ;;  %vm1138_vm3 = vcmp.eq.f32.partialorder %v1137_v4, 8.507059e+37 }
 0x187   : > { %v1117_v33 = vadd.f32 %v1979_v43, %v1116_v30  ;;  %v1983_v34 = vpop.eup %1982  ;;  %v1787_v39 = vmul.f32 -1.442695, %v2512_v18 }
 0x188   : > { %v1029_v42 = vadd.f32 1.0, %v1983_v34 }
 0x189   : > { %v1121_v41 = vsel %vm1120_vm13, %v1979_v43, %v1117_v33  ;;  %1986 = vpow2.f32 %v1787_v39 }
 0x18a   : > { %v1985_v44 = vpop.eup %1984  ;;  %v1126_v45 = vsel %vm1123_vm14, %v1125_v38, %v1121_v41  ;;  %1988 = vrcp.f32 %v1029_v42  ;;  %v1152_v59 = vand.u32 2147483647, %v1029_v42  ;;  %v1154_v60 = vand.u32 2147483648, %v1029_v42 }
 0x18b   : > { %v1283_v37 = vmul.f32 %v1126_v45, %v2486_v7  ;;  %v1129_v24 = vmul.f32 %v1985_v44, %v1028_v11  ;;  %vm1134_vm15 = vweird.f32 %v1985_v44  ;;  %vm1148_vm4 = vweird.f32 %v1029_v42 }
 0x18c   : > { %v956_v47 = vpop.f32.mrf.mxu1  ;;  %vm2525_vm1 = vmor %vm1133_vm0, %vm1134_vm15  ;;  %v1155_v10 = vor.u32 1.1754944e-38, %v1154_v60  ;;  %vm1153_vm6 = vcmp.eq.f32.partialorder %v1152_v59, 8.507059e+37 }
 0x18d   : > { %v1130_v46 = vsub.f32 1.0, %v1129_v24  ;;  %v1296_v48 = vpack.c.bf16 %v1283_v37, %v1282_v21  ;;  %v2518_v27 = vadd.f32 %v2443_v51, %v956_v47 }
 0x18f   : > { %v1131_v50 = vmul.f32 %v1985_v44, %v1130_v46  ;;  %1813 = vmatmul.msk.bf16.gmra.mxu2 %vm900_vm9, %v1296_v48  ;;  %v1987_v53 = vpop.eup %1986  ;;  %v1788_v52 = vmul.f32 -1.442695, %v2518_v27 }
 0x190   : > { %v1989_v54 = vpop.eup %1988  ;;  %v2522_v56 = vadd.f32 1.0, %v1987_v53 }
 0x191   : > { %v1132_v29 = vadd.f32 %v1985_v44, %v1131_v50  ;;  %v1144_v7 = vmul.f32 %v1989_v54, %v1029_v42  ;;  %1990 = vpow2.f32 %v1788_v52  ;;  %vm1149_vm2 = vweird.f32 %v1989_v54 }
 0x192   : > { %1992 = vrcp.f32 %v2522_v56  ;;  %vm1150_vm5 = vmor %vm1148_vm4, %vm1149_vm2  ;;  %vm1163_vm8 = vweird.f32 %v2522_v56 }
 0x193   : > { %v1145_v57 = vsub.f32 1.0, %v1144_v7  ;;  %v1136_v49 = vsel %vm2525_vm1, %v1985_v44, %v1132_v29 }
 0x194   : > { %v959_v40 = vpop.f32.mrf.mxu1  ;;  %v1141_v9 = vsel %vm1138_vm3, %v1140_v36, %v1136_v49 }
 0x195   : > { %v1146_v0 = vmul.f32 %v1989_v54, %v1145_v57  ;;  %v2532_v3 = vadd.f32 %v2443_v51, %v959_v40  ;;  %v1284_v16 = vmul.f32 %v1141_v9, %v2497_v61  ;;  %v1169_v61 = vand.u32 2147483648, %v2522_v56 }
 0x197   : > { %v1991_v55 = vpop.eup %1990  ;;  %v1147_v5 = vadd.f32 %v1989_v54, %v1146_v0  ;;  %v1789_v6 = vmul.f32 -1.442695, %v2532_v3  ;;  %v1170_v35 = vor.u32 1.1754944e-38, %v1169_v61 }
 0x198   : > { %v1993_v8 = vpop.eup %1992  ;;  %v1031_v12 = vadd.f32 1.0, %v1991_v55 }
 0x199   : > { %v1151_v13 = vsel %vm1150_vm5, %v1989_v54, %v1147_v5  ;;  %v1159_v14 = vmul.f32 %v1993_v8, %v2522_v56  ;;  %1994 = vpow2.f32 %v1789_v6  ;;  %vm1164_vm7 = vweird.f32 %v1993_v8 }
 0x19a   : > { %v1156_v15 = vsel %vm1153_vm6, %v1155_v10, %v1151_v13  ;;  %1996 = vrcp.f32 %v1031_v12  ;;  %vm1165_vm10 = vmor %vm1163_vm8, %vm1164_vm7  ;;  %v1184_v32 = vand.u32 2147483648, %v1031_v12  ;;  %v1182_v34 = vand.u32 2147483647, %v1031_v12 }
 0x19b   : > { %v1285_v43 = vmul.f32 %v1156_v15, %v2504_v17  ;;  %v1160_v62 = vsub.f32 1.0, %v1159_v14  ;;  %v1167_v17 = vand.u32 2147483647, %v2522_v56  ;;  %vm1178_vm13 = vweird.f32 %v1031_v12 }
 0x19c   : > { %v961_v19 = vpop.f32.mrf.mxu1  ;;  %v1185_v44 = vor.u32 1.1754944e-38, %v1184_v32  ;;  %vm1183_vm15 = vcmp.eq.f32.partialorder %v1182_v34, 8.507059e+37 }
 0x19d   : > { %v1161_v20 = vmul.f32 %v1993_v8, %v1160_v62  ;;  %v2539_v22 = vadd.f32 %v2443_v51, %v961_v19  ;;  %v1297_v2 = vpack.c.bf16 %v1285_v43, %v1284_v16  ;;  %vm1168_vm12 = vcmp.eq.f32.partialorder %v1167_v17, 8.507059e+37 }
 0x19f   : > { %v1995_v11 = vpop.eup %1994  ;;  %v1790_v23 = vmul.f32 -1.442695, %v2539_v22  ;;  %1814 = vmatmul.msk.bf16.gmra.mxu2 %vm900_vm9, %v1297_v2  ;;  %v1162_v28 = vadd.f32 %v1993_v8, %v1161_v20 }
 0x1a0   : > { %v1997_v25 = vpop.eup %1996  ;;  %v1032_v26 = vadd.f32 1.0, %v1995_v11 }
 0x1a1   : > { %v1174_v30 = vmul.f32 %v1997_v25, %v1031_v12  ;;  %1998 = vpow2.f32 %v1790_v23  ;;  %v1166_v1 = vsel %vm1165_vm10, %v1993_v8, %v1162_v28  ;;  %vm1179_vm11 = vweird.f32 %v1997_v25 }
 0x1a2   : > { %2000 = vrcp.f32 %v1032_v26  ;;  %v1171_v42 = vsel %vm1168_vm12, %v1170_v35, %v1166_v1  ;;  %vm1180_vm14 = vmor %vm1178_vm13, %vm1179_vm11  ;;  %v1199_v57 = vand.u32 2147483648, %v1032_v26  ;;  %vm1193_vm1 = vweird.f32 %v1032_v26 }
 0x1a3   : > { %v1175_v31 = vsub.f32 1.0, %v1174_v30  ;;  %v1286_v47 = vmul.f32 %v1171_v42, %v2512_v18 }
 0x1a4   : > { %v1200_v55 = vor.u32 1.1754944e-38, %v1199_v57 }
 0x1a5   : > { %v1176_v33 = vmul.f32 %v1997_v25, %v1175_v31 }
 0x1a7   : > { %v1999_v38 = vpop.eup %1998  ;;  %v1177_v39 = vadd.f32 %v1997_v25, %v1176_v33 }
 0x1a8   : > { %v2001_v41 = vpop.eup %2000  ;;  %v1033_v45 = vadd.f32 1.0, %v1999_v38 }
 0x1a9   : > { %v1181_v21 = vsel %vm1180_vm14, %v1997_v25, %v1177_v39  ;;  %v1189_v37 = vmul.f32 %v2001_v41, %v1032_v26  ;;  %vm1194_vm0 = vweird.f32 %v2001_v41 }
 0x1aa   : > { %v964_v24 = vpop.f32.mrf.mxu3  ;;  %v1186_v46 = vsel %vm1183_vm15, %v1185_v44, %v1181_v21  ;;  %2002 = vrcp.f32 %v1033_v45  ;;  %vm1195_vm2 = vmor %vm1193_vm1, %vm1194_vm0  ;;  %v1214_v59 = vand.u32 2147483648, %v1033_v45  ;;  %v1212_v36 = vand.u32 2147483647, %v1033_v45 }
 0x1ab   : > { %v1287_v48 = vmul.f32 %v1186_v46, %v2518_v27  ;;  %v1190_v50 = vsub.f32 1.0, %v1189_v37  ;;  %v2549_v53 = vadd.f32 %v2443_v51, %v964_v24  ;;  %v1197_v27 = vand.u32 2147483647, %v1032_v26 }
 0x1ac   : > { %vm1208_vm5 = vweird.f32 %v1033_v45  ;;  %v1215_v9 = vor.u32 1.1754944e-38, %v1214_v59  ;;  %vm1213_vm7 = vcmp.eq.f32.partialorder %v1212_v36, 8.507059e+37 }
 0x1ad   : > { %v1191_v52 = vmul.f32 %v2001_v41, %v1190_v50  ;;  %v1791_v54 = vmul.f32 -1.442695, %v2549_v53  ;;  %v1298_v56 = vpack.c.bf16 %v1287_v48, %v1286_v47  ;;  %vm1198_vm4 = vcmp.eq.f32.partialorder %v1197_v27, 8.507059e+37 }
 0x1af   : > { %2004 = vpow2.f32 %v1791_v54  ;;  %1815 = vmatmul.msk.bf16.gmra.mxu2 %vm900_vm9, %v1298_v56  ;;  %v1192_v7 = vadd.f32 %v2001_v41, %v1191_v52 }
 0x1b0   : > { %v2003_v29 = vpop.eup %2002 }
 0x1b1   : > { %v1204_v63 = vmul.f32 %v2003_v29, %v1033_v45  ;;  %v1196_v49 = vsel %vm1195_vm2, %v2001_v41, %v1192_v7  ;;  %vm1209_vm3 = vweird.f32 %v2003_v29 }
 0x1b2   : > { %v966_v4 = vpop.f32.mrf.mxu3  ;;  %v1201_v8 = vsel %vm1198_vm4, %v1200_v55, %v1196_v49  ;;  %vm1210_vm6 = vmor %vm1208_vm5, %vm1209_vm3 }
 0x1b3   : > { %v2554_v18 = vadd.f32 %v2443_v51, %v966_v4  ;;  %v1205_v58 = vsub.f32 1.0, %v1204_v63  ;;  %v1288_v15 = vmul.f32 %v1201_v8, %v2532_v3 }
 0x1b5   : > { %v1792_v60 = vmul.f32 -1.442695, %v2554_v18  ;;  %v2005_v40 = vpop.eup %2004  ;;  %v1206_v0 = vmul.f32 %v2003_v29, %v1205_v58 }
 0x1b6   : > { %v1034_v5 = vadd.f32 1.0, %v2005_v40 }
 0x1b7   : > { %2006 = vpow2.f32 %v1792_v60  ;;  %v1207_v6 = vadd.f32 %v2003_v29, %v1206_v0 }
 0x1b8   : > { %2008 = vrcp.f32 %v1034_v5  ;;  %v1229_v32 = vand.u32 2147483648, %v1034_v5  ;;  %vm1223_vm10 = vweird.f32 %v1034_v5  ;;  %v1227_v1 = vand.u32 2147483647, %v1034_v5 }
 0x1b9   : > { %v1211_v10 = vsel %vm1210_vm6, %v2003_v29, %v1207_v6 }
 0x1ba   : > { %v969_v12 = vpop.f32.mrf.mxu3  ;;  %v1216_v13 = vsel %vm1213_vm7, %v1215_v9, %v1211_v10  ;;  %v1230_v39 = vor.u32 1.1754944e-38, %v1229_v32  ;;  %vm1228_vm13 = vcmp.eq.f32.partialorder %v1227_v1, 8.507059e+37  ;;  %v2577_v9 = vld [vmem:[%s2691_s8] ss:$0 sm:$0xff] }
 0x1bb   : > { %v2558_v14 = vadd.f32 %v2443_v51, %v969_v12  ;;  %v1289_v16 = vmul.f32 %v1216_v13, %v2539_v22 }
 0x1bd   : > { %v2007_v43 = vpop.eup %2006  ;;  %v1793_v62 = vmul.f32 -1.442695, %v2558_v14  ;;  %v1299_v20 = vpack.c.bf16 %v1289_v16, %v1288_v15 }
 0x1be   : > { %v1035_v19 = vadd.f32 1.0, %v2007_v43  ;;  %v2009_v2 = vpop.eup %2008 }
 0x1bf   : > { %2010 = vpow2.f32 %v1793_v62  ;;  %v1219_v11 = vmul.f32 %v2009_v2, %v1034_v5  ;;  %1816 = vmatmul.msk.bf16.gmra.mxu2 %vm900_vm9, %v1299_v20  ;;  %vm1224_vm8 = vweird.f32 %v2009_v2 }
 0x1c0   : > { %2012 = vrcp.f32 %v1035_v19  ;;  %vm1225_vm11 = vmor %vm1223_vm10, %vm1224_vm8  ;;  %v1244_v34 = vand.u32 2147483648, %v1035_v19  ;;  %v1242_v38 = vand.u32 2147483647, %v1035_v19  ;;  %vm1238_vm14 = vweird.f32 %v1035_v19 }
 0x1c1   : > { %v1220_v23 = vsub.f32 1.0, %v1219_v11 }
 0x1c2   : > { %v971_v25 = vpop.f32.mrf.mxu3  ;;  %v1245_v21 = vor.u32 1.1754944e-38, %v1244_v34  ;;  %vm1243_vm0 = vcmp.eq.f32.partialorder %v1242_v38, 8.507059e+37 }
 0x1c3   : > { %v2565_v26 = vadd.f32 %v2443_v51, %v971_v25  ;;  %v1221_v28 = vmul.f32 %v2009_v2, %v1220_v23 }
 0x1c5   : > { %v2011_v3 = vpop.eup %2010  ;;  %v1794_v22 = vmul.f32 -1.442695, %v2565_v26  ;;  %v1222_v17 = vadd.f32 %v2009_v2, %v1221_v28 }
 0x1c6   : > { %v2013_v30 = vpop.eup %2012  ;;  %v1036_v61 = vadd.f32 1.0, %v2011_v3 }
 0x1c7   : > { %v1234_v31 = vmul.f32 %v2013_v30, %v1035_v19  ;;  %2014 = vpow2.f32 %v1794_v22  ;;  %v1226_v35 = vsel %vm1225_vm11, %v2009_v2, %v1222_v17  ;;  %vm1239_vm12 = vweird.f32 %v2013_v30 }
 0x1c8   : > { %2016 = vrcp.f32 %v1036_v61  ;;  %v1231_v45 = vsel %vm1228_vm13, %v1230_v39, %v1226_v35  ;;  %vm1240_vm15 = vmor %vm1238_vm14, %vm1239_vm12  ;;  %v1259_v4 = vand.u32 2147483648, %v1036_v61  ;;  %vm1253_vm2 = vweird.f32 %v1036_v61 }
 0x1c9   : > { %v1235_v33 = vsub.f32 1.0, %v1234_v31  ;;  %v1290_v48 = vmul.f32 %v1231_v45, %v2549_v53  ;;  %v1257_v57 = vand.u32 2147483647, %v1036_v61 }
 0x1cb   : > { %v1236_v51 = vmul.f32 %v2013_v30, %v1235_v33  ;;  %vm1258_vm5 = vcmp.eq.f32.partialorder %v1257_v57, 8.507059e+37 }
 0x1cd   : > { %v2015_v41 = vpop.eup %2014  ;;  %v1237_v42 = vadd.f32 %v2013_v30, %v1236_v51 }
 0x1ce   : > { %v2017_v44 = vpop.eup %2016  ;;  %v1037_v37 = vadd.f32 1.0, %v2015_v41 }
 0x1cf   : > { %v1241_v24 = vsel %vm1240_vm15, %v2013_v30, %v1237_v42  ;;  %v1249_v46 = vmul.f32 %v2017_v44, %v1036_v61  ;;  %vm1254_vm1 = vweird.f32 %v2017_v44  ;;  %vm1577_vm15 = vcmask 1043456  }
 0x1d0   : > { %v1246_v47 = vsel %vm1243_vm0, %v1245_v21, %v1241_v24  ;;  %2018 = vrcp.f32 %v1037_v37  ;;  %vm1255_vm3 = vmor %vm1253_vm2, %vm1254_vm1  ;;  %v1274_v58 = vand.u32 2147483648, %v1037_v37  ;;  %v1272_v53 = vand.u32 2147483647, %v1037_v37 }
 0x1d1   : > { %v1291_v50 = vmul.f32 %v1246_v47, %v2554_v18  ;;  %v1250_v52 = vsub.f32 1.0, %v1249_v46  ;;  %v1260_v18 = vor.u32 1.1754944e-38, %v1259_v4  ;;  %vm1268_vm6 = vweird.f32 %v1037_v37 }
 0x1d2   : > { %v1275_v0 = vor.u32 1.1754944e-38, %v1274_v58  ;;  %vm1273_vm8 = vcmp.eq.f32.partialorder %v1272_v53, 8.507059e+37 }
 0x1d3   : > { %v1300_v54 = vpack.c.bf16 %v1291_v50, %v1290_v48  ;;  %v1251_v56 = vmul.f32 %v2017_v44, %v1250_v52 }
 0x1d5   : > { %1817 = vmatmul.msk.bf16.vlgmr.msra.gmra.mxu3 %vm900_vm9, %v1300_v54  ;;  %v1252_v7 = vadd.f32 %v2017_v44, %v1251_v56 }
 0x1d6   : > { %v2019_v29 = vpop.eup %2018 }
 0x1d7   : > { %v1264_v63 = vmul.f32 %v2019_v29, %v1037_v37  ;;  %v1256_v59 = vsel %vm1255_vm3, %v2017_v44, %v1252_v7  ;;  %vm1269_vm4 = vweird.f32 %v2019_v29 }
 0x1d8   : > { %v1261_v49 = vsel %vm1258_vm5, %v1260_v18, %v1256_v59  ;;  %vm1270_vm7 = vmor %vm1268_vm6, %vm1269_vm4 }
 0x1d9   : > { %v1265_v27 = vsub.f32 1.0, %v1264_v63  ;;  %v1292_v5 = vmul.f32 %v1261_v49, %v2558_v14  ;;  %v1562_v49 = vlaneseq }
 0x1db   : > { %v1266_v60 = vmul.f32 %v2019_v29, %v1265_v27 }
 0x1dd   : > { %v1267_v40 = vadd.f32 %v2019_v29, %v1266_v60 }
 0x1df   : > { %v1271_v36 = vsel %vm1270_vm7, %v2019_v29, %v1267_v40 }
 0x1e0   : > { %v1276_v55 = vsel %vm1273_vm8, %v1275_v0, %v1271_v36 }
 0x1e1   : > { %v1293_v6 = vmul.f32 %v1276_v55, %v2565_v26  ;;  %v1559_v55 = vld [vmem:[%s416_s30] sm:$0x1]  ;;  %s390_s30 = scalar_lea.vmem [#allocation2], %s2625_s18 }
 0x1e2   : > { %s1601_s11 = sshll.u32 %s390_s30, 4  ;;  %s1602_s11 = int_to_ptr.vmem [resolvable:$true] %s1601_s11 }
 0x1e3   : > { %v1301_v8 = vpack.c.bf16 %v1293_v6, %v1292_v5 }
 0x1e5   : > { %1818 = vmatmul.msk.bf16.gmra.mxu3 %vm900_vm9, %v1301_v8 }
 0x1f2   : > { %v1371_v10 = vpop.f32.mrf.mxu2 }
 0x1f3   : > { %v1372_v12 = vadd.f32 %v2577_v9, %v1371_v10 }
 0x1f5   : > { %1411 = vxpose.xlu0.b32.start [1/16] (narrow) %v1372_v12, 8  ;;  %1459 = vrot.lane.b32.xlu1 %v1372_v12, %s2120_s20  ;;  %v1560_v12 = vmul.f32 0.4, %v1559_v55 }
 0x1fa   : > { %v1373_v13 = vpop.f32.mrf.mxu2 }
 0x1fb   : > { %v1374_v14 = vadd.f32 %v2577_v9, %v1373_v13  ;;  %v1566_v13 = vstv %s1565_s12  ;;  %s1587_s12 = scalar_lea.sflag [#allocation3], %s2625_s18 }
 0x1fd   : > { %1412 = vxpose.xlu0.b32.cont [2/16] (narrow) %v1374_v14, 8  ;;  %1461 = vrot.lane.b32.xlu1 %v1374_v14, %s2120_s20 }
 0x202   : > { %v1376_v15 = vpop.f32.mrf.mxu2 }
 0x203   : > { %v1377_v16 = vadd.f32 %v2577_v9, %v1376_v15 }
 0x205   : > { %1463 = vrot.lane.b32.xlu2 %v1377_v16, %s2120_s20  ;;  %1413 = vxpose.xlu0.b32.cont [3/16] (narrow) %v1377_v16, 8  ;;  %v1571_v16 = vshrl.u32 %v1562_v49, 7 }
 0x20a   : > { %v1378_v43 = vpop.f32.mrf.mxu2 }
 0x20b   : > { %v1379_v62 = vadd.f32 %v2577_v9, %v1378_v43  ;;  %v1891_v43 = vld [vmem:[%s399_s27] ss:$0 sm:$0xff] }
 0x20c   : > { %vm1574_vm14 = vcmp.eq.s32.totalorder %v1571_v16, %v1891_v43 }
 0x20d   : > { %1465 = vrot.lane.b32.xlu2 %v1379_v62, %s2120_s20  ;;  %1414 = vxpose.xlu0.b32.cont [4/16] (narrow) %v1379_v62, 8 }
 0x212   : > { %v1381_v19 = vpop.f32.mrf.mxu2 }
 0x213   : > { %v1382_v20 = vadd.f32 %v2577_v9, %v1381_v19 }
 0x215   : > { %1415 = vxpose.xlu0.b32.cont [5/16] (narrow) %v1382_v20, 8  ;;  %1467 = vrot.lane.b32.xlu1 %v1382_v20, %s2120_s20 }
 0x21a   : > { %v1383_v2 = vpop.f32.mrf.mxu2 }
 0x21b   : > { %v1384_v11 = vadd.f32 %v2577_v9, %v1383_v2 }
 0x21d   : > { %1469 = vrot.lane.b32.xlu2 %v1384_v11, %s2120_s20  ;;  %1416 = vxpose.xlu0.b32.cont [6/16] (narrow) %v1384_v11, 8 }
 0x222   : > { %v1386_v23 = vpop.f32.mrf.mxu2 }
 0x223   : > { %v1387_v25 = vadd.f32 %v2577_v9, %v1386_v23 }
 0x225   : > { %1417 = vxpose.xlu0.b32.cont [7/16] (narrow) %v1387_v25, 8  ;;  %1471 = vrot.lane.b32.xlu1 %v1387_v25, %s2120_s20 }
 0x22a   : > { %v1388_v26 = vpop.f32.mrf.mxu2 }
 0x22b   : > { %v1389_v28 = vadd.f32 %v2577_v9, %v1388_v26 }
 0x22d   : > { %1473 = vrot.lane.b32.xlu2 %v1389_v28, %s2120_s20  ;;  %1418 = vxpose.xlu0.b32.cont [8/16] (narrow) %v1389_v28, 8 }
 0x232   : > { %v1391_v3 = vpop.f32.mrf.mxu2 }
 0x233   : > { %v1392_v22 = vadd.f32 %v2577_v9, %v1391_v3 }
 0x235   : > { %1419 = vxpose.xlu0.b32.cont [9/16] (narrow) %v1392_v22, 8  ;;  %1475 = vrot.lane.b32.xlu1 %v1392_v22, %s2120_s20 }
 0x23a   : > { %v1393_v30 = vpop.f32.mrf.mxu2 }
 0x23b   : > { %v1394_v61 = vadd.f32 %v2577_v9, %v1393_v30 }
 0x23d   : > { %1477 = vrot.lane.b32.xlu2 %v1394_v61, %s2120_s20  ;;  %1420 = vxpose.xlu0.b32.cont [10/16] (narrow) %v1394_v61, 8 }
 0x242   : > { %v1396_v17 = vpop.f32.mrf.mxu2 }
 0x243   : > { %v1397_v31 = vadd.f32 %v2577_v9, %v1396_v17 }
 0x245   : > { %1421 = vxpose.xlu0.b32.cont [11/16] (narrow) %v1397_v31, 8  ;;  %1479 = vrot.lane.b32.xlu1 %v1397_v31, %s2120_s20 }
 0x24a   : > { %v1398_v32 = vpop.f32.mrf.mxu2 }
 0x24b   : > { %v1399_v1 = vadd.f32 %v2577_v9, %v1398_v32 }
 0x24d   : > { %1481 = vrot.lane.b32.xlu2 %v1399_v1, %s2120_s20  ;;  %1422 = vxpose.xlu0.b32.cont [12/16] (narrow) %v1399_v1, 8 }
 0x258   : > { %v1401_v33 = vpop.f32.mrf.mxu3 }
 0x259   : > { %v1402_v34 = vadd.f32 %v2577_v9, %v1401_v33 }
 0x25b   : > { %1423 = vxpose.xlu0.b32.cont [13/16] (narrow) %v1402_v34, 8  ;;  %1483 = vrot.lane.b32.xlu1 %v1402_v34, %s2120_s20 }
 0x25f   : > { %v1464_v21 = vpop.permute.xlu2 %1463 }
 0x260   : > { %v1403_v35 = vpop.f32.mrf.mxu3 }
 0x261   : > { %v1404_v51 = vadd.f32 %v2577_v9, %v1403_v35 }
 0x263   : > { %1485 = vrot.lane.b32.xlu2 %v1404_v51, %s2120_s20  ;;  %1424 = vxpose.xlu0.b32.cont [14/16] (narrow) %v1404_v51, 8 }
 0x267   : > { %v1460_v44 = vpop.permute.xlu1 %1459  ;;  %v1466_v37 = vpop.permute.xlu2 %1465 }
 0x268   : > { %v1406_v38 = vpop.f32.mrf.mxu3 }
 0x269   : > { %v1407_v39 = vadd.f32 %v2577_v9, %v1406_v38 }
 0x26b   : > { %1425 = vxpose.xlu0.b32.cont [15/16] (narrow) %v1407_v39, 8  ;;  %1487 = vrot.lane.b32.xlu1 %v1407_v39, %s2120_s20 }
 0x26f   : > { %v1462_v45 = vpop.permute.xlu1 %1461 }
 0x270   : > { %v1408_v41 = vpop.f32.mrf.mxu3 }
 0x271   : > { %v1409_v42 = vadd.f32 %v2577_v9, %v1408_v41  ;;  %v1563_v9 = vand.u32 127, %v1562_v49 }
 0x273   : > { %1489 = vrot.lane.b32.xlu2 %v1409_v42, %s2120_s20  ;;  %1426 = vxpose.xlu0.b32.end [16/16] (narrow) %v1409_v42, 8  ;;  %vm1567_vm13 = vcmp.lt.s32.totalorder %v1563_v9, %v1566_v13  ;;  %s2038_s20 = sshra.s32 %s1604_s1, 4  ;;  %s2039_s20 = int_to_ptr.hbm [resolvable:$true] %s2038_s20 }
 0x274   : > { %s2040_s25 = scalar_lea.hbm %s2039_s20, 1  ;;  %p2045_p1 = scmp.lt.s32.totalorder %s2039_s20, %s2692_s9 }
 0x275   : > { %p2041_p12 = scmp.ne.s32.totalorder %s2039_s20, %s2040_s25  ;;  %p2046_p2 = scmp.lt.s32.totalorder %s2044_s26, %s2040_s25 }
 0x277   : > { %v1470_v46 = vpop.permute.xlu2 %1469  ;;  %p2042_p13 = pnand %p2041_p12, %p2214_p5  ;;  %p2047_p3 = por %p2046_p2, %p2045_p1 }
 0x279   : > { %p2043_p0 = pneg %p2042_p13 }
 0x27b   : > { %p2048_p4 = pnand %p2047_p3, %p2043_p0 }
 0x287   : > { %v1468_v24 = vpop.permute.xlu1 %1467  ;;  %v1474_v48 = vpop.permute.xlu2 %1473 }
 0x297   : > { %v1472_v47 = vpop.permute.xlu1 %1471  ;;  %v1478_v52 = vpop.permute.xlu2 %1477 }
 0x29f   : > { %v1427_v6 = vpop.trf.xlu0 }
 0x2a0   : > { %1507 = vxpose.xlu1.b32.start [1/16] (narrow) %v1460_v44, 8 }
 0x2a7   : > { %v1476_v50 = vpop.permute.xlu1 %1475  ;;  %v1482_v56 = vpop.permute.xlu2 %1481 }
 0x2a8   : > { %1508 = vxpose.xlu1.b32.cont [2/16] (narrow) %v1462_v45, 8 }
 0x2b0   : > { %1509 = vxpose.xlu1.b32.cont [3/16] (narrow) %v1464_v21, 8 }
 0x2b7   : > { %v1480_v54 = vpop.permute.xlu1 %1479 }
 0x2b8   : > { %1510 = vxpose.xlu1.b32.cont [4/16] (narrow) %v1466_v37, 8 }
 0x2bd   : > { %v1486_v7 = vpop.permute.xlu2 %1485 }
 0x2c0   : > { %1511 = vxpose.xlu1.b32.cont [5/16] (narrow) %v1468_v24, 8 }
 0x2c8   : > { %1512 = vxpose.xlu1.b32.cont [6/16] (narrow) %v1470_v46, 8 }
 0x2cd   : > { %v1484_v29 = vpop.permute.xlu1 %1483  ;;  %v1490_v4 = vpop.permute.xlu2 %1489 }
 0x2d0   : > { %1513 = vxpose.xlu1.b32.cont [7/16] (narrow) %v1472_v47, 8 }
 0x2d8   : > { %1514 = vxpose.xlu1.b32.cont [8/16] (narrow) %v1474_v48, 8 }
 0x2dd   : > { %v1488_v63 = vpop.permute.xlu1 %1487 }
 0x2e0   : > { %1515 = vxpose.xlu1.b32.cont [9/16] (narrow) %v1476_v50, 8 }
 0x2e8   : > { %1516 = vxpose.xlu1.b32.cont [10/16] (narrow) %v1478_v52, 8 }
 0x2f0   : > { %1517 = vxpose.xlu1.b32.cont [11/16] (narrow) %v1480_v54, 8 }
 0x2f8   : > { %1518 = vxpose.xlu1.b32.cont [12/16] (narrow) %v1482_v56, 8 }
 0x300   : > { %1519 = vxpose.xlu1.b32.cont [13/16] (narrow) %v1484_v29, 8 }
 0x308   : > { %1520 = vxpose.xlu1.b32.cont [14/16] (narrow) %v1486_v7, 8 }
 0x310   : > { %1521 = vxpose.xlu1.b32.cont [15/16] (narrow) %v1488_v63, 8 }
 0x318   : > { %1522 = vxpose.xlu1.b32.end [16/16] (narrow) %v1490_v4, 8 }
 0x344   : > { %v1523_v57 = vpop.trf.xlu1 }
 0x345   : > { %v1819_v27 = vmul.f32 -1.442695, %v1523_v57 }
 0x347   : > { %2020 = vpow2.f32 %v1819_v27 }
 0x34d   : > { %v2021_v58 = vpop.eup %2020 }
 0x34e   : > { %v1542_v59 = vadd.f32 1.0, %v2021_v58 }
 0x350   : > { %2022 = vrcp.f32 %v1542_v59  ;;  %v1554_v40 = vand.u32 2147483648, %v1542_v59  ;;  %v1552_v36 = vand.u32 2147483647, %v1542_v59  ;;  %vm1548_vm10 = vweird.f32 %v1542_v59 }
 0x352   : > { %v1555_v8 = vor.u32 1.1754944e-38, %v1554_v40  ;;  %vm1553_vm12 = vcmp.eq.f32.partialorder %v1552_v36, 8.507059e+37 }
 0x356   : > { %v2023_v60 = vpop.eup %2022 }
 0x357   : > { %v1544_v53 = vmul.f32 %v2023_v60, %v1542_v59  ;;  %vm1549_vm9 = vweird.f32 %v2023_v60 }
 0x358   : > { %vm1550_vm11 = vmor %vm1548_vm10, %vm1549_vm9 }
 0x359   : > { %v1545_v18 = vsub.f32 1.0, %v1544_v53 }
 0x35b   : > { %v1546_v0 = vmul.f32 %v2023_v60, %v1545_v18 }
 0x35d   : > { %v1547_v5 = vadd.f32 %v2023_v60, %v1546_v0 }
 0x35f   : > { %v1551_v10 = vsel %vm1550_vm11, %v2023_v60, %v1547_v5 }
 0x360   : > { %v1556_v14 = vsel %vm1553_vm12, %v1555_v8, %v1551_v10 }
 0x361   : > { %v1558_v15 = vmul.f32 %v1556_v14, %v1427_v6 }
 0x363   : > { %v1561_v62 = vadd.f32 %v1560_v12, %v1558_v15 }
 0x365   : > { %v1568_v19 = vsel %vm1567_vm13, %v1561_v62, 0.0 }
 0x366   : > { %v1575_v20 = vperm.slane %v1568_v19, 0  ;;  %1569 = vst [vmem:[%s390_s30] sm:$0x1] %v1568_v19 }
 0x367   : > { %2051 = shalt.err (!%p2048_p4)
}
 0x368   : > { %1843 = dma.vmem_to_hbm [thread:$0]  (%p2214_p5), %s1602_s11, 16, %s1604_s1, %s1587_s12   ;;  %v1576_v2 = vsel %vm1574_vm14, %v1575_v20, 0.0  ;;  %vm1584_vm0 = vcmask 24576  }
 0x369   : > { %v1578_v11 = vsel %vm1577_vm15, %v1576_v2, 0.0  ;;  %s1612_s20 = scalar_lea.hbm %s2693_s10, %s2197_s17  ;;  %s396_s25 = scalar_lea.vmem [#allocation4], %s2625_s18 }
 0x36a   : > { %1579 = vadd.xlane.f32.xlu2 %v1578_v11  ;;  %s1614_s27 = sshll.u32 %s396_s25, 4  ;;  %s1616_s26 = sshll.u32 %s1612_s20, 4  ;;  %s1615_s27 = int_to_ptr.vmem [resolvable:$true] %s1614_s27  ;;  %s1617_s26 = int_to_ptr.hbm [resolvable:$true] %s1616_s26 }
 0x36b   : > { %s1591_s1 = scalar_lea.sflag [#allocation5], %s2625_s18  ;;  %s2066_s11 = sshra.s32 %s1617_s26, 4  ;;  %s2067_s11 = int_to_ptr.hbm [resolvable:$true] %s2066_s11 }
 0x36c   : > { %s2068_s12 = scalar_lea.hbm %s2067_s11, 1  ;;  %s2072_s17 = scalar_lea.hbm %s2693_s10, 2 }
 0x36d   : > { %p2069_p7 = scmp.ne.s32.totalorder %s2067_s11, %s2068_s12  ;;  %p2073_p10 = scmp.lt.s32.totalorder %s2067_s11, %s2693_s10 }
 0x36e   : > { %p2074_p11 = scmp.lt.s32.totalorder %s2072_s17, %s2068_s12 }
 0x36f   : > { %p2070_p8 = pnand %p2069_p7, %p2214_p5 }
 0x370   : > { %p2075_p12 = por %p2074_p11, %p2073_p10 }
 0x371   : > { %p2071_p9 = pneg %p2070_p8 }
 0x373   : > { %p2076_p13 = pnand %p2075_p12, %p2071_p9 }
 0x3dd   : > { %v1580_v23 = vpop.xlane.xlu2 %1579 }
 0x3de   : > { %v1582_v25 = vperm.slane %v1580_v23, %v1563_v9 }
 0x3e0   : > { %1585 = vst.msk [vmem:[%s396_s25] sm:$0x1] %vm1584_vm0, %v1582_v25 }
 0x3e1   : > { %2079 = shalt.err (!%p2076_p13)
}
 0x3e2   : > { %1844 = dma.vmem_to_hbm [thread:$0]  (%p2214_p5), %s1615_s27, 16, %s1617_s26, %s1591_s1  }
 0x3e3 PF: > { %p1854_p0 = scmp.ge.s32.totalorder %s2118_s16, 2  ;;  %s1628_s18 = sand.u32 1, %s2106_s13  }
 0x3e4   : > { %s1629_s20 = scalar_lea.sflag [#allocation3], %s1628_s18 }
 0x3e5   : > { %p1848_p1 = pnand %p1854_p0, %p2218_p6 }
 0x3e7   : > { %p1849_p2 = pneg %p1848_p1 }
 0x3e9   : > { %2097 = dma.done.wait (%p1849_p2), %s1629_s20, 16  }
 0x3ea   : > { %2099 = vsyncadd (%p1849_p2), %s1629_s20, 4294967280  ;;  %s1638_s25 = scalar_lea.sflag [#allocation5], %s1628_s18 }
 0x3eb   : > { %2101 = dma.done.wait (%p1849_p2), %s1638_s25, 16  }
 0x3ec   : > { %2103 = vsyncadd (%p1849_p2), %s1638_s25, 4294967280  ;;  %p24_p5 = scmp.ge.s32.totalorder %s2201_s19, 4   ;;  %s2712_s13 = smov %s2110_s14 }
 0x3ed   : > { %s2713_s14 = smov %s2114_s15  ;;  %s2714_s15 = smov %s2212_s22 }
 0x3ee   : > { %s2715_s16 = smov %s2201_s19  ;;  %26 = sbr.rel (!%p24_p5) target bundleno = 7 (0x7), region = 114 }
 0x3f3   :  { %1643 = vsyncpa [#allocation3], 1 }
 0x3f4   :  { %1645 = vsyncpa [#allocation3 + $0x1], 1 }
 0x3f5   :  { %1646 = vsyncpa [#allocation5], 1 }
 0x3f6   :  { %1648 = vsyncpa [#allocation5 + $0x1], 1 }

</bundles_post_ra>
